<compile_context>
chip_gen: v7x
topology: tpu7x:2x2x1
jax: 0.10.0
libtpu: 0.0.40
codegen_flags: <defaults>
</compile_context>

<pallas_src>
import functools

import jax
import jax.numpy as jnp
from jax.experimental import pallas as pl
from jax.experimental.pallas import tpu as pltpu

# -------------------- model hyper-parameters (module __init__) ---------------
NUM_LAYER = 3           # num_layer
EMB_DIM = 128           # emb_dim (lane-friendly)
NUM_TASKS = 8           # num_tasks
TASK_PAD = 128          # lane-dense padding of the task axis for the output store

NUM_ATOM_TYPE = 120
NUM_CHIRALITY_TAG = 3
NUM_BOND_TYPE = 6       # index 4 = self-loop bond type
NUM_BOND_DIRECTION = 3

# -------------------- synthetic graph sizes ----------------------------------
N_NODES = 24            # multiple of 8 -> no sublane padding, BN stats exact
N_EDGES = 48
N_GRAPHS = 2


# ============================ fused Pallas kernel =============================
def moce_graph_pred_kernel(a_ref, h0_ref, esum_ref,
                           w1_ref, b1_ref, w2_ref, b2_ref,
                           gamma_ref, beta_ref,
                           p_ref, wp_ref, bp_ref,
                           wmap_ref, bmap_ref,
                           out_ref, *, num_layer):
    """All layers + BN + ReLU + pooling heads + out_layer_map + sigmoid."""
    a = a_ref[...].astype(jnp.bfloat16)        # [N, N]  adjacency (exact in bf16)
    p = p_ref[...].astype(jnp.bfloat16)        # [G, N]  mean-pool matrix
    h = h0_ref[...]                            # [N, D]  f32 node state
    logits = bmap_ref[...]                     # [1, Tp] out_layer_map bias

    for l in range(num_layer):
        # ---- message passing: sum over incoming edges (incl self loops) ----
        aggr = jnp.dot(a, h.astype(jnp.bfloat16),
                       preferred_element_type=jnp.float32) + esum_ref[l]
        # ---- expert MLP: Linear(D,2D) -> ReLU -> Linear(2D,D) ----
        h1 = jnp.dot(aggr.astype(jnp.bfloat16), w1_ref[l],
                     preferred_element_type=jnp.float32) + b1_ref[l]
        h1 = jnp.maximum(h1, 0.0)
        h2 = jnp.dot(h1.astype(jnp.bfloat16), w2_ref[l],
                     preferred_element_type=jnp.float32) + b2_ref[l]

        # ---- per-layer graph prediction y_l (MoCE head, pre-BN output) ----
        pooled = jnp.dot(p, h2.astype(jnp.bfloat16),
                         preferred_element_type=jnp.float32)          # [G, D]
        y_l = jnp.sum(pooled * wp_ref[l], axis=-1, keepdims=True) + bp_ref[l]  # [G,1]
        logits = logits + y_l * wmap_ref[l]                           # [G, Tp]

        # ---- BatchNorm (batch stats, single pass) -> ReLU; dropout = id ----
        mean = jnp.mean(h2, axis=0, keepdims=True)
        var = jnp.mean(h2 * h2, axis=0, keepdims=True) - mean * mean
        scale = gamma_ref[l] * jax.lax.rsqrt(var + 1e-5)
        shift = beta_ref[l] - mean * scale
        h = jnp.maximum(h2 * scale + shift, 0.0)

    out_ref[...] = jax.nn.sigmoid(logits)      # lane-dense (G, Tp) store


# ============================ pallas_call wrapper =============================
def _full_spec(shape):
    nd = len(shape)
    return pl.BlockSpec(shape, lambda i, _nd=nd: (0,) * _nd)


@jax.jit
def moce_graph_pred_forward(params, x, edge_index, edge_attr, batch):
    N = x.shape[0]
    D, L, G, TP = EMB_DIM, NUM_LAYER, N_GRAPHS, TASK_PAD
    src, dst = edge_index[0], edge_index[1]    # PyG: row = source, col = target

    # ---- AtomEncoder: node embedding (gather glue) ----
    H0 = params["x_emb1"][x[:, 0]] + params["x_emb2"][x[:, 1]]            # [N, D]

    # ---- dense adjacency with self loops (A[target, source]) ----
    A = (jnp.zeros((N, N), jnp.float32).at[dst, src].add(1.0)
         + jnp.eye(N, dtype=jnp.float32))

    # ---- all per-layer edge sums in one batched gather/scatter (hoisted) ----
    e1, e2 = params["edge_emb1"], params["edge_emb2"]                     # [L,·,D]
    e_emb = e1[:, edge_attr[:, 0], :] + e2[:, edge_attr[:, 1], :]         # [L, E, D]
    seg = jnp.zeros((L, N, D), jnp.float32).at[:, dst, :].add(e_emb)      # [L, N, D]
    self_emb = e1[:, 4, :] + e2[:, 0, :]                                  # [L, D]
    Esum = seg + self_emb[:, None, :]                                     # [L, N, D]

    # ---- mean pooling matrix P[g, i] = 1/|g| if node i in graph g ----
    onehot = (batch[None, :] == jnp.arange(G)[:, None]).astype(jnp.float32)
    counts = jnp.maximum(onehot.sum(axis=1, keepdims=True), 1.0)
    P = onehot / counts                                                   # [G, N]

    kernel = functools.partial(moce_graph_pred_kernel, num_layer=L)
    out_padded = pl.pallas_call(
        kernel,
        out_shape=jax.ShapeDtypeStruct((G, TP), jnp.float32),
        grid=(1,),
        in_specs=[
            _full_spec((N, N)),            # A
            _full_spec((N, D)),            # H0
            _full_spec((L, N, D)),         # Esum
            _full_spec((L, D, 2 * D)),     # W1 (bf16)
            _full_spec((L, 1, 2 * D)),     # b1
            _full_spec((L, 2 * D, D)),     # W2 (bf16)
            _full_spec((L, 1, D)),         # b2
            _full_spec((L, 1, D)),         # gamma
            _full_spec((L, 1, D)),         # beta
            _full_spec((G, N)),            # P
            _full_spec((L, 1, D)),         # Wp  (per-layer graph head)
            _full_spec((L, 1, 1)),         # bp
            _full_spec((L, 1, TP)),        # Wmap (out_layer_map, padded lanes)
            _full_spec((1, TP)),           # bmap
        ],
        out_specs=_full_spec((G, TP)),
        compiler_params=pltpu.CompilerParams(dimension_semantics=("arbitrary",)),
    )(A, H0, Esum,
      params["W1"].astype(jnp.bfloat16), params["b1"],
      params["W2"].astype(jnp.bfloat16), params["b2"],
      params["gamma"], params["beta"],
      P, params["Wp"], params["bp"],
      params["Wmap"], params["bmap"])

    return out_padded[:, :NUM_TASKS]           # [G, num_tasks]


# ============================ parameter init ==================================
def init_params(key):
    L, D, T, TP = NUM_LAYER, EMB_DIM, NUM_TASKS, TASK_PAD
    ks = jax.random.split(key, 8)
    return {
        "x_emb1": 0.1 * jax.random.normal(ks[0], (NUM_ATOM_TYPE, D), jnp.float32),
        "x_emb2": 0.1 * jax.random.normal(ks[1], (NUM_CHIRALITY_TAG, D), jnp.float32),
        "edge_emb1": 0.1 * jax.random.normal(ks[2], (L, NUM_BOND_TYPE, D), jnp.float32),
        "edge_emb2": 0.1 * jax.random.normal(ks[3], (L, NUM_BOND_DIRECTION, D), jnp.float32),
        "W1": (1.0 / jnp.sqrt(1.0 * D)) *
              jax.random.normal(ks[4], (L, D, 2 * D), jnp.float32),
        "b1": jnp.zeros((L, 1, 2 * D), jnp.float32),
        "W2": (1.0 / jnp.sqrt(2.0 * D)) *
              jax.random.normal(ks[5], (L, 2 * D, D), jnp.float32),
        "b2": jnp.zeros((L, 1, D), jnp.float32),
        "gamma": jnp.ones((L, 1, D), jnp.float32),
        "beta": jnp.zeros((L, 1, D), jnp.float32),
        # per-layer graph prediction head (stand-in for the MoCE output head)
        "Wp": (1.0 / jnp.sqrt(1.0 * D)) *
              jax.random.normal(ks[6], (L, 1, D), jnp.float32),
        "bp": jnp.zeros((L, 1, 1), jnp.float32),
        # out_layer_map = Linear(num_layer, num_tasks), weight init = ones,
        # padded to TASK_PAD lanes (padding columns are zero).
        "Wmap": jnp.zeros((L, 1, TP), jnp.float32).at[:, :, :T].set(1.0),
        "bmap": jnp.zeros((1, TP), jnp.float32).at[0, :T].set(
            (1.0 / jnp.sqrt(1.0 * L)) * jax.random.normal(ks[7], (T,), jnp.float32)),
    }


# ============================ main ============================================
if __name__ == "__main__":
    key = jax.random.PRNGKey(0)
    kx, kc, ks, kd, kb, kbd, kp = jax.random.split(key, 7)

    # node features: [N, 2] int (atom type, chirality tag)
    x = jnp.stack([
        jax.random.randint(kx, (N_NODES,), 0, NUM_ATOM_TYPE),
        jax.random.randint(kc, (N_NODES,), 0, NUM_CHIRALITY_TAG),
    ], axis=1).astype(jnp.int32)

    # edge_index: [2, E]; keep edges within each graph's node range
    half = N_NODES // 2
    src0 = jax.random.randint(ks, (N_EDGES // 2,), 0, half)
    dst0 = jax.random.randint(kd, (N_EDGES // 2,), 0, half)
    src1 = jax.random.randint(ks, (N_EDGES // 2,), half, N_NODES)
    dst1 = jax.random.randint(kd, (N_EDGES // 2,), half, N_NODES)
    edge_index = jnp.stack([jnp.concatenate([src0, src1]),
                            jnp.concatenate([dst0, dst1])], axis=0).astype(jnp.int32)

    # edge_attr: [E, 2] int (bond type 0..3, bond direction)
    edge_attr = jnp.stack([
        jax.random.randint(kb, (N_EDGES,), 0, 4),
        jax.random.randint(kbd, (N_EDGES,), 0, NUM_BOND_DIRECTION),
    ], axis=1).astype(jnp.int32)

    # batch assignment: first half of nodes -> graph 0, second half -> graph 1
    batch = jnp.concatenate([jnp.zeros((half,), jnp.int32),
                             jnp.ones((N_NODES - half,), jnp.int32)])

    params = init_params(kp)

    out = moce_graph_pred_forward(params, x, edge_index, edge_attr, batch)
    out = jax.block_until_ready(out)

    assert out.shape == (N_GRAPHS, NUM_TASKS)
    assert bool(jnp.all(jnp.isfinite(out)))
    assert bool(jnp.all((out >= 0.0) & (out <= 1.0)))
    print("KERNEL_OK")
</pallas_src>

<mosaic_0001>
module attributes {stable_mosaic.version = 11 : i64} {
  func.func private @main(%arg0: i32) attributes {dimension_semantics = [#tpu.dimension_semantics<core_parallel>], iteration_bounds = array<i64: 2>, tpu.core_type = #tpu.core_type<sc_scalar_subcore>, window_params = []} {
    return
  }
}

module attributes {stable_mosaic.version = 11 : i64} {
  func.func private @main(%arg0: i32) attributes {dimension_semantics = [#tpu.dimension_semantics<core_parallel>], iteration_bounds = array<i64: 2>, tpu.core_type = #tpu.core_type<sc_scalar_subcore>, window_params = []} {
    return
  }
}

module attributes {stable_mosaic.version = 11 : i64} {
  func.func @moce_graph_pred_kernel(%arg0: i32, %arg1: memref<24x24xf32, #tpu.memory_space<vmem>>, %arg2: memref<24x128xf32, #tpu.memory_space<vmem>>, %arg3: memref<3x24x128xf32, #tpu.memory_space<vmem>>, %arg4: memref<3x128x256xbf16, #tpu.memory_space<vmem>>, %arg5: memref<3x1x256xf32, #tpu.memory_space<vmem>>, %arg6: memref<3x256x128xbf16, #tpu.memory_space<vmem>>, %arg7: memref<3x1x128xf32, #tpu.memory_space<vmem>>, %arg8: memref<3x1x128xf32, #tpu.memory_space<vmem>>, %arg9: memref<3x1x128xf32, #tpu.memory_space<vmem>>, %arg10: memref<2x24xf32, #tpu.memory_space<vmem>>, %arg11: memref<3x1x128xf32, #tpu.memory_space<vmem>>, %arg12: memref<3x1x1xf32, #tpu.memory_space<vmem>>, %arg13: memref<3x1x128xf32, #tpu.memory_space<vmem>>, %arg14: memref<1x128xf32, #tpu.memory_space<vmem>>, %arg15: memref<2x128xf32, #tpu.memory_space<vmem>>) attributes {dimension_semantics = [#tpu.dimension_semantics<arbitrary>], iteration_bounds = array<i64: 1>, scalar_prefetch = 0 : i64, scratch_operands = 0 : i64, tpu.core_type = #tpu.core_type<tc>, window_params = [{pipeline_mode = #tpu.pipeline_mode<synchronous>, transform_indices = @transform_0, window_bounds = array<i64: 24, 24>}, {pipeline_mode = #tpu.pipeline_mode<synchronous>, transform_indices = @transform_1, window_bounds = array<i64: 24, 128>}, {pipeline_mode = #tpu.pipeline_mode<synchronous>, transform_indices = @transform_2, window_bounds = array<i64: 3, 24, 128>}, {pipeline_mode = #tpu.pipeline_mode<synchronous>, transform_indices = @transform_3, window_bounds = array<i64: 3, 128, 256>}, {pipeline_mode = #tpu.pipeline_mode<synchronous>, transform_indices = @transform_4, window_bounds = array<i64: 3, 1, 256>}, {pipeline_mode = #tpu.pipeline_mode<synchronous>, transform_indices = @transform_5, window_bounds = array<i64: 3, 256, 128>}, {pipeline_mode = #tpu.pipeline_mode<synchronous>, transform_indices = @transform_6, window_bounds = array<i64: 3, 1, 128>}, {pipeline_mode = #tpu.pipeline_mode<synchronous>, transform_indices = @transform_7, window_bounds = array<i64: 3, 1, 128>}, {pipeline_mode = #tpu.pipeline_mode<synchronous>, transform_indices = @transform_8, window_bounds = array<i64: 3, 1, 128>}, {pipeline_mode = #tpu.pipeline_mode<synchronous>, transform_indices = @transform_9, window_bounds = array<i64: 2, 24>}, {pipeline_mode = #tpu.pipeline_mode<synchronous>, transform_indices = @transform_10, window_bounds = array<i64: 3, 1, 128>}, {pipeline_mode = #tpu.pipeline_mode<synchronous>, transform_indices = @transform_11, window_bounds = array<i64: 3, 1, 1>}, {pipeline_mode = #tpu.pipeline_mode<synchronous>, transform_indices = @transform_12, window_bounds = array<i64: 3, 1, 128>}, {pipeline_mode = #tpu.pipeline_mode<synchronous>, transform_indices = @transform_13, window_bounds = array<i64: 1, 128>}, {pipeline_mode = #tpu.pipeline_mode<synchronous>, transform_indices = @transform_14, window_bounds = array<i64: 2, 128>}]} {
    %c0 = arith.constant 0 : index
    %c0_0 = arith.constant 0 : index
    %0 = vector.load %arg1[%c0, %c0_0] : memref<24x24xf32, #tpu.memory_space<vmem>>, vector<24x24xf32>
    %1 = arith.truncf %0 : vector<24x24xf32> to vector<24x24xbf16>
    %c0_1 = arith.constant 0 : index
    %c0_2 = arith.constant 0 : index
    %2 = vector.load %arg10[%c0_1, %c0_2] : memref<2x24xf32, #tpu.memory_space<vmem>>, vector<2x24xf32>
    %3 = arith.truncf %2 : vector<2x24xf32> to vector<2x24xbf16>
    %c0_3 = arith.constant 0 : index
    %c0_4 = arith.constant 0 : index
    %4 = vector.load %arg2[%c0_3, %c0_4] : memref<24x128xf32, #tpu.memory_space<vmem>>, vector<24x128xf32>
    %c0_5 = arith.constant 0 : index
    %c0_6 = arith.constant 0 : index
    %5 = vector.load %arg14[%c0_5, %c0_6] : memref<1x128xf32, #tpu.memory_space<vmem>>, vector<1x128xf32>
    %6 = arith.truncf %4 : vector<24x128xf32> to vector<24x128xbf16>
    %cst = arith.constant dense<0.000000e+00> : vector<24x128xf32>
    %7 = tpu.matmul %1, %6, %cst {dimension_numbers = #tpu.dot_dimension_numbers<[1], [0], [0], [1], [0, 0, 1, 1], [], []>} : vector<24x24xbf16>, vector<24x128xbf16>, vector<24x128xf32> -> vector<24x128xf32>
    %c0_7 = arith.constant 0 : index
    %c0_8 = arith.constant 0 : index
    %c0_9 = arith.constant 0 : index
    %8 = vector.load %arg3[%c0_7, %c0_8, %c0_9] : memref<3x24x128xf32, #tpu.memory_space<vmem>>, vector<1x24x128xf32>
    %9 = vector.shape_cast %8 : vector<1x24x128xf32> to vector<24x128xf32>
    %10 = arith.addf %7, %9 : vector<24x128xf32>
    %11 = arith.truncf %10 : vector<24x128xf32> to vector<24x128xbf16>
    %c0_10 = arith.constant 0 : index
    %c0_11 = arith.constant 0 : index
    %c0_12 = arith.constant 0 : index
    %12 = vector.load %arg4[%c0_10, %c0_11, %c0_12] : memref<3x128x256xbf16, #tpu.memory_space<vmem>>, vector<1x128x256xbf16>
    %13 = vector.shape_cast %12 : vector<1x128x256xbf16> to vector<128x256xbf16>
    %cst_13 = arith.constant dense<0.000000e+00> : vector<24x256xf32>
    %14 = tpu.matmul %11, %13, %cst_13 {dimension_numbers = #tpu.dot_dimension_numbers<[1], [0], [0], [1], [0, 0, 1, 1], [], []>} : vector<24x128xbf16>, vector<128x256xbf16>, vector<24x256xf32> -> vector<24x256xf32>
    %c0_14 = arith.constant 0 : index
    %c0_15 = arith.constant 0 : index
    %c0_16 = arith.constant 0 : index
    %15 = vector.load %arg5[%c0_14, %c0_15, %c0_16] : memref<3x1x256xf32, #tpu.memory_space<vmem>>, vector<1x1x256xf32>
    %16 = vector.shape_cast %15 : vector<1x1x256xf32> to vector<1x256xf32>
    %17 = vector.broadcast %16 : vector<1x256xf32> to vector<24x256xf32>
    %18 = arith.addf %14, %17 : vector<24x256xf32>
    %cst_17 = arith.constant 0.000000e+00 : f32
    %19 = vector.broadcast %cst_17 : f32 to vector<24x256xf32>
    %20 = arith.maximumf %18, %19 : vector<24x256xf32>
    %21 = arith.truncf %20 : vector<24x256xf32> to vector<24x256xbf16>
    %c0_18 = arith.constant 0 : index
    %c0_19 = arith.constant 0 : index
    %c0_20 = arith.constant 0 : index
    %22 = vector.load %arg6[%c0_18, %c0_19, %c0_20] : memref<3x256x128xbf16, #tpu.memory_space<vmem>>, vector<1x256x128xbf16>
    %23 = vector.shape_cast %22 : vector<1x256x128xbf16> to vector<256x128xbf16>
    %cst_21 = arith.constant dense<0.000000e+00> : vector<24x128xf32>
    %24 = tpu.matmul %21, %23, %cst_21 {dimension_numbers = #tpu.dot_dimension_numbers<[1], [0], [0], [1], [0, 0, 1, 1], [], []>} : vector<24x256xbf16>, vector<256x128xbf16>, vector<24x128xf32> -> vector<24x128xf32>
    %c0_22 = arith.constant 0 : index
    %c0_23 = arith.constant 0 : index
    %c0_24 = arith.constant 0 : index
    %25 = vector.load %arg7[%c0_22, %c0_23, %c0_24] : memref<3x1x128xf32, #tpu.memory_space<vmem>>, vector<1x1x128xf32>
    %26 = vector.shape_cast %25 : vector<1x1x128xf32> to vector<1x128xf32>
    %27 = vector.broadcast %26 : vector<1x128xf32> to vector<24x128xf32>
    %28 = arith.addf %24, %27 : vector<24x128xf32>
    %29 = arith.truncf %28 : vector<24x128xf32> to vector<24x128xbf16>
    %cst_25 = arith.constant dense<0.000000e+00> : vector<2x128xf32>
    %30 = tpu.matmul %3, %29, %cst_25 {dimension_numbers = #tpu.dot_dimension_numbers<[1], [0], [0], [1], [0, 0, 1, 1], [], []>} : vector<2x24xbf16>, vector<24x128xbf16>, vector<2x128xf32> -> vector<2x128xf32>
    %c0_26 = arith.constant 0 : index
    %c0_27 = arith.constant 0 : index
    %c0_28 = arith.constant 0 : index
    %31 = vector.load %arg11[%c0_26, %c0_27, %c0_28] : memref<3x1x128xf32, #tpu.memory_space<vmem>>, vector<1x1x128xf32>
    %32 = vector.shape_cast %31 : vector<1x1x128xf32> to vector<1x128xf32>
    %33 = vector.broadcast %32 : vector<1x128xf32> to vector<2x128xf32>
    %34 = arith.mulf %30, %33 : vector<2x128xf32>
    %cst_29 = arith.constant dense<0.000000e+00> : vector<2xf32>
    %35 = vector.multi_reduction <add>, %34, %cst_29 [1] : vector<2x128xf32> to vector<2xf32>
    %36 = vector.shape_cast %35 : vector<2xf32> to vector<2x1xf32>
    %c0_30 = arith.constant 0 : index
    %c0_31 = arith.constant 0 : index
    %c0_32 = arith.constant 0 : index
    %37 = vector.load %arg12[%c0_30, %c0_31, %c0_32] : memref<3x1x1xf32, #tpu.memory_space<vmem>>, vector<1x1x1xf32>
    %38 = vector.shape_cast %37 : vector<1x1x1xf32> to vector<1x1xf32>
    %39 = vector.broadcast %38 : vector<1x1xf32> to vector<2x1xf32>
    %40 = arith.addf %36, %39 : vector<2x1xf32>
    %c0_33 = arith.constant 0 : index
    %c0_34 = arith.constant 0 : index
    %c0_35 = arith.constant 0 : index
    %41 = vector.load %arg13[%c0_33, %c0_34, %c0_35] : memref<3x1x128xf32, #tpu.memory_space<vmem>>, vector<1x1x128xf32>
    %42 = vector.shape_cast %41 : vector<1x1x128xf32> to vector<1x128xf32>
    %43 = vector.broadcast %40 : vector<2x1xf32> to vector<2x128xf32>
    %44 = vector.broadcast %42 : vector<1x128xf32> to vector<2x128xf32>
    %45 = arith.mulf %43, %44 : vector<2x128xf32>
    %46 = vector.broadcast %5 : vector<1x128xf32> to vector<2x128xf32>
    %47 = arith.addf %46, %45 : vector<2x128xf32>
    %cst_36 = arith.constant dense<0.000000e+00> : vector<128xf32>
    %48 = vector.multi_reduction <add>, %28, %cst_36 [0] : vector<24x128xf32> to vector<128xf32>
    %49 = vector.shape_cast %48 : vector<128xf32> to vector<1x128xf32>
    %cst_37 = arith.constant 2.400000e+01 : f32
    %50 = vector.broadcast %cst_37 : f32 to vector<1x128xf32>
    %51 = arith.divf %49, %50 : vector<1x128xf32>
    %52 = arith.mulf %28, %28 : vector<24x128xf32>
    %cst_38 = arith.constant dense<0.000000e+00> : vector<128xf32>
    %53 = vector.multi_reduction <add>, %52, %cst_38 [0] : vector<24x128xf32> to vector<128xf32>
    %54 = vector.shape_cast %53 : vector<128xf32> to vector<1x128xf32>
    %cst_39 = arith.constant 2.400000e+01 : f32
    %55 = vector.broadcast %cst_39 : f32 to vector<1x128xf32>
    %56 = arith.divf %54, %55 : vector<1x128xf32>
    %57 = arith.mulf %51, %51 : vector<1x128xf32>
    %58 = arith.subf %56, %57 : vector<1x128xf32>
    %c0_40 = arith.constant 0 : index
    %c0_41 = arith.constant 0 : index
    %c0_42 = arith.constant 0 : index
    %59 = vector.load %arg8[%c0_40, %c0_41, %c0_42] : memref<3x1x128xf32, #tpu.memory_space<vmem>>, vector<1x1x128xf32>
    %60 = vector.shape_cast %59 : vector<1x1x128xf32> to vector<1x128xf32>
    %cst_43 = arith.constant 9.99999974E-6 : f32
    %61 = vector.broadcast %cst_43 : f32 to vector<1x128xf32>
    %62 = arith.addf %58, %61 : vector<1x128xf32>
    %63 = math.rsqrt %62 : vector<1x128xf32>
    %64 = arith.mulf %60, %63 : vector<1x128xf32>
    %c0_44 = arith.constant 0 : index
    %c0_45 = arith.constant 0 : index
    %c0_46 = arith.constant 0 : index
    %65 = vector.load %arg9[%c0_44, %c0_45, %c0_46] : memref<3x1x128xf32, #tpu.memory_space<vmem>>, vector<1x1x128xf32>
    %66 = vector.shape_cast %65 : vector<1x1x128xf32> to vector<1x128xf32>
    %67 = arith.mulf %51, %64 : vector<1x128xf32>
    %68 = arith.subf %66, %67 : vector<1x128xf32>
    %69 = vector.broadcast %64 : vector<1x128xf32> to vector<24x128xf32>
    %70 = arith.mulf %28, %69 : vector<24x128xf32>
    %71 = vector.broadcast %68 : vector<1x128xf32> to vector<24x128xf32>
    %72 = arith.addf %70, %71 : vector<24x128xf32>
    %cst_47 = arith.constant 0.000000e+00 : f32
    %73 = vector.broadcast %cst_47 : f32 to vector<24x128xf32>
    %74 = arith.maximumf %72, %73 : vector<24x128xf32>
    %75 = arith.truncf %74 : vector<24x128xf32> to vector<24x128xbf16>
    %cst_48 = arith.constant dense<0.000000e+00> : vector<24x128xf32>
    %76 = tpu.matmul %1, %75, %cst_48 {dimension_numbers = #tpu.dot_dimension_numbers<[1], [0], [0], [1], [0, 0, 1, 1], [], []>} : vector<24x24xbf16>, vector<24x128xbf16>, vector<24x128xf32> -> vector<24x128xf32>
    %c1 = arith.constant 1 : index
    %c0_49 = arith.constant 0 : index
    %c0_50 = arith.constant 0 : index
    %77 = vector.load %arg3[%c1, %c0_49, %c0_50] : memref<3x24x128xf32, #tpu.memory_space<vmem>>, vector<1x24x128xf32>
    %78 = vector.shape_cast %77 : vector<1x24x128xf32> to vector<24x128xf32>
    %79 = arith.addf %76, %78 : vector<24x128xf32>
    %80 = arith.truncf %79 : vector<24x128xf32> to vector<24x128xbf16>
    %c1_51 = arith.constant 1 : index
    %c0_52 = arith.constant 0 : index
    %c0_53 = arith.constant 0 : index
    %81 = vector.load %arg4[%c1_51, %c0_52, %c0_53] : memref<3x128x256xbf16, #tpu.memory_space<vmem>>, vector<1x128x256xbf16>
    %82 = vector.shape_cast %81 : vector<1x128x256xbf16> to vector<128x256xbf16>
    %cst_54 = arith.constant dense<0.000000e+00> : vector<24x256xf32>
    %83 = tpu.matmul %80, %82, %cst_54 {dimension_numbers = #tpu.dot_dimension_numbers<[1], [0], [0], [1], [0, 0, 1, 1], [], []>} : vector<24x128xbf16>, vector<128x256xbf16>, vector<24x256xf32> -> vector<24x256xf32>
    %c1_55 = arith.constant 1 : index
    %c0_56 = arith.constant 0 : index
    %c0_57 = arith.constant 0 : index
    %84 = vector.load %arg5[%c1_55, %c0_56, %c0_57] : memref<3x1x256xf32, #tpu.memory_space<vmem>>, vector<1x1x256xf32>
    %85 = vector.shape_cast %84 : vector<1x1x256xf32> to vector<1x256xf32>
    %86 = vector.broadcast %85 : vector<1x256xf32> to vector<24x256xf32>
    %87 = arith.addf %83, %86 : vector<24x256xf32>
    %cst_58 = arith.constant 0.000000e+00 : f32
    %88 = vector.broadcast %cst_58 : f32 to vector<24x256xf32>
    %89 = arith.maximumf %87, %88 : vector<24x256xf32>
    %90 = arith.truncf %89 : vector<24x256xf32> to vector<24x256xbf16>
    %c1_59 = arith.constant 1 : index
    %c0_60 = arith.constant 0 : index
    %c0_61 = arith.constant 0 : index
    %91 = vector.load %arg6[%c1_59, %c0_60, %c0_61] : memref<3x256x128xbf16, #tpu.memory_space<vmem>>, vector<1x256x128xbf16>
    %92 = vector.shape_cast %91 : vector<1x256x128xbf16> to vector<256x128xbf16>
    %cst_62 = arith.constant dense<0.000000e+00> : vector<24x128xf32>
    %93 = tpu.matmul %90, %92, %cst_62 {dimension_numbers = #tpu.dot_dimension_numbers<[1], [0], [0], [1], [0, 0, 1, 1], [], []>} : vector<24x256xbf16>, vector<256x128xbf16>, vector<24x128xf32> -> vector<24x128xf32>
    %c1_63 = arith.constant 1 : index
    %c0_64 = arith.constant 0 : index
    %c0_65 = arith.constant 0 : index
    %94 = vector.load %arg7[%c1_63, %c0_64, %c0_65] : memref<3x1x128xf32, #tpu.memory_space<vmem>>, vector<1x1x128xf32>
    %95 = vector.shape_cast %94 : vector<1x1x128xf32> to vector<1x128xf32>
    %96 = vector.broadcast %95 : vector<1x128xf32> to vector<24x128xf32>
    %97 = arith.addf %93, %96 : vector<24x128xf32>
    %98 = arith.truncf %97 : vector<24x128xf32> to vector<24x128xbf16>
    %cst_66 = arith.constant dense<0.000000e+00> : vector<2x128xf32>
    %99 = tpu.matmul %3, %98, %cst_66 {dimension_numbers = #tpu.dot_dimension_numbers<[1], [0], [0], [1], [0, 0, 1, 1], [], []>} : vector<2x24xbf16>, vector<24x128xbf16>, vector<2x128xf32> -> vector<2x128xf32>
    %c1_67 = arith.constant 1 : index
    %c0_68 = arith.constant 0 : index
    %c0_69 = arith.constant 0 : index
    %100 = vector.load %arg11[%c1_67, %c0_68, %c0_69] : memref<3x1x128xf32, #tpu.memory_space<vmem>>, vector<1x1x128xf32>
    %101 = vector.shape_cast %100 : vector<1x1x128xf32> to vector<1x128xf32>
    %102 = vector.broadcast %101 : vector<1x128xf32> to vector<2x128xf32>
    %103 = arith.mulf %99, %102 : vector<2x128xf32>
    %cst_70 = arith.constant dense<0.000000e+00> : vector<2xf32>
    %104 = vector.multi_reduction <add>, %103, %cst_70 [1] : vector<2x128xf32> to vector<2xf32>
    %105 = vector.shape_cast %104 : vector<2xf32> to vector<2x1xf32>
    %c1_71 = arith.constant 1 : index
    %c0_72 = arith.constant 0 : index
    %c0_73 = arith.constant 0 : index
    %106 = vector.load %arg12[%c1_71, %c0_72, %c0_73] : memref<3x1x1xf32, #tpu.memory_space<vmem>>, vector<1x1x1xf32>
    %107 = vector.shape_cast %106 : vector<1x1x1xf32> to vector<1x1xf32>
    %108 = vector.broadcast %107 : vector<1x1xf32> to vector<2x1xf32>
    %109 = arith.addf %105, %108 : vector<2x1xf32>
    %c1_74 = arith.constant 1 : index
    %c0_75 = arith.constant 0 : index
    %c0_76 = arith.constant 0 : index
    %110 = vector.load %arg13[%c1_74, %c0_75, %c0_76] : memref<3x1x128xf32, #tpu.memory_space<vmem>>, vector<1x1x128xf32>
    %111 = vector.shape_cast %110 : vector<1x1x128xf32> to vector<1x128xf32>
    %112 = vector.broadcast %109 : vector<2x1xf32> to vector<2x128xf32>
    %113 = vector.broadcast %111 : vector<1x128xf32> to vector<2x128xf32>
    %114 = arith.mulf %112, %113 : vector<2x128xf32>
    %115 = arith.addf %47, %114 : vector<2x128xf32>
    %cst_77 = arith.constant dense<0.000000e+00> : vector<128xf32>
    %116 = vector.multi_reduction <add>, %97, %cst_77 [0] : vector<24x128xf32> to vector<128xf32>
    %117 = vector.shape_cast %116 : vector<128xf32> to vector<1x128xf32>
    %cst_78 = arith.constant 2.400000e+01 : f32
    %118 = vector.broadcast %cst_78 : f32 to vector<1x128xf32>
    %119 = arith.divf %117, %118 : vector<1x128xf32>
    %120 = arith.mulf %97, %97 : vector<24x128xf32>
    %cst_79 = arith.constant dense<0.000000e+00> : vector<128xf32>
    %121 = vector.multi_reduction <add>, %120, %cst_79 [0] : vector<24x128xf32> to vector<128xf32>
    %122 = vector.shape_cast %121 : vector<128xf32> to vector<1x128xf32>
    %cst_80 = arith.constant 2.400000e+01 : f32
    %123 = vector.broadcast %cst_80 : f32 to vector<1x128xf32>
    %124 = arith.divf %122, %123 : vector<1x128xf32>
    %125 = arith.mulf %119, %119 : vector<1x128xf32>
    %126 = arith.subf %124, %125 : vector<1x128xf32>
    %c1_81 = arith.constant 1 : index
    %c0_82 = arith.constant 0 : index
    %c0_83 = arith.constant 0 : index
    %127 = vector.load %arg8[%c1_81, %c0_82, %c0_83] : memref<3x1x128xf32, #tpu.memory_space<vmem>>, vector<1x1x128xf32>
    %128 = vector.shape_cast %127 : vector<1x1x128xf32> to vector<1x128xf32>
    %cst_84 = arith.constant 9.99999974E-6 : f32
    %129 = vector.broadcast %cst_84 : f32 to vector<1x128xf32>
    %130 = arith.addf %126, %129 : vector<1x128xf32>
    %131 = math.rsqrt %130 : vector<1x128xf32>
    %132 = arith.mulf %128, %131 : vector<1x128xf32>
    %c1_85 = arith.constant 1 : index
    %c0_86 = arith.constant 0 : index
    %c0_87 = arith.constant 0 : index
    %133 = vector.load %arg9[%c1_85, %c0_86, %c0_87] : memref<3x1x128xf32, #tpu.memory_space<vmem>>, vector<1x1x128xf32>
    %134 = vector.shape_cast %133 : vector<1x1x128xf32> to vector<1x128xf32>
    %135 = arith.mulf %119, %132 : vector<1x128xf32>
    %136 = arith.subf %134, %135 : vector<1x128xf32>
    %137 = vector.broadcast %132 : vector<1x128xf32> to vector<24x128xf32>
    %138 = arith.mulf %97, %137 : vector<24x128xf32>
    %139 = vector.broadcast %136 : vector<1x128xf32> to vector<24x128xf32>
    %140 = arith.addf %138, %139 : vector<24x128xf32>
    %cst_88 = arith.constant 0.000000e+00 : f32
    %141 = vector.broadcast %cst_88 : f32 to vector<24x128xf32>
    %142 = arith.maximumf %140, %141 : vector<24x128xf32>
    %143 = arith.truncf %142 : vector<24x128xf32> to vector<24x128xbf16>
    %cst_89 = arith.constant dense<0.000000e+00> : vector<24x128xf32>
    %144 = tpu.matmul %1, %143, %cst_89 {dimension_numbers = #tpu.dot_dimension_numbers<[1], [0], [0], [1], [0, 0, 1, 1], [], []>} : vector<24x24xbf16>, vector<24x128xbf16>, vector<24x128xf32> -> vector<24x128xf32>
    %c2 = arith.constant 2 : index
    %c0_90 = arith.constant 0 : index
    %c0_91 = arith.constant 0 : index
    %145 = vector.load %arg3[%c2, %c0_90, %c0_91] : memref<3x24x128xf32, #tpu.memory_space<vmem>>, vector<1x24x128xf32>
    %146 = vector.shape_cast %145 : vector<1x24x128xf32> to vector<24x128xf32>
    %147 = arith.addf %144, %146 : vector<24x128xf32>
    %148 = arith.truncf %147 : vector<24x128xf32> to vector<24x128xbf16>
    %c2_92 = arith.constant 2 : index
    %c0_93 = arith.constant 0 : index
    %c0_94 = arith.constant 0 : index
    %149 = vector.load %arg4[%c2_92, %c0_93, %c0_94] : memref<3x128x256xbf16, #tpu.memory_space<vmem>>, vector<1x128x256xbf16>
    %150 = vector.shape_cast %149 : vector<1x128x256xbf16> to vector<128x256xbf16>
    %cst_95 = arith.constant dense<0.000000e+00> : vector<24x256xf32>
    %151 = tpu.matmul %148, %150, %cst_95 {dimension_numbers = #tpu.dot_dimension_numbers<[1], [0], [0], [1], [0, 0, 1, 1], [], []>} : vector<24x128xbf16>, vector<128x256xbf16>, vector<24x256xf32> -> vector<24x256xf32>
    %c2_96 = arith.constant 2 : index
    %c0_97 = arith.constant 0 : index
    %c0_98 = arith.constant 0 : index
    %152 = vector.load %arg5[%c2_96, %c0_97, %c0_98] : memref<3x1x256xf32, #tpu.memory_space<vmem>>, vector<1x1x256xf32>
    %153 = vector.shape_cast %152 : vector<1x1x256xf32> to vector<1x256xf32>
    %154 = vector.broadcast %153 : vector<1x256xf32> to vector<24x256xf32>
    %155 = arith.addf %151, %154 : vector<24x256xf32>
    %cst_99 = arith.constant 0.000000e+00 : f32
    %156 = vector.broadcast %cst_99 : f32 to vector<24x256xf32>
    %157 = arith.maximumf %155, %156 : vector<24x256xf32>
    %158 = arith.truncf %157 : vector<24x256xf32> to vector<24x256xbf16>
    %c2_100 = arith.constant 2 : index
    %c0_101 = arith.constant 0 : index
    %c0_102 = arith.constant 0 : index
    %159 = vector.load %arg6[%c2_100, %c0_101, %c0_102] : memref<3x256x128xbf16, #tpu.memory_space<vmem>>, vector<1x256x128xbf16>
    %160 = vector.shape_cast %159 : vector<1x256x128xbf16> to vector<256x128xbf16>
    %cst_103 = arith.constant dense<0.000000e+00> : vector<24x128xf32>
    %161 = tpu.matmul %158, %160, %cst_103 {dimension_numbers = #tpu.dot_dimension_numbers<[1], [0], [0], [1], [0, 0, 1, 1], [], []>} : vector<24x256xbf16>, vector<256x128xbf16>, vector<24x128xf32> -> vector<24x128xf32>
    %c2_104 = arith.constant 2 : index
    %c0_105 = arith.constant 0 : index
    %c0_106 = arith.constant 0 : index
    %162 = vector.load %arg7[%c2_104, %c0_105, %c0_106] : memref<3x1x128xf32, #tpu.memory_space<vmem>>, vector<1x1x128xf32>
    %163 = vector.shape_cast %162 : vector<1x1x128xf32> to vector<1x128xf32>
    %164 = vector.broadcast %163 : vector<1x128xf32> to vector<24x128xf32>
    %165 = arith.addf %161, %164 : vector<24x128xf32>
    %166 = arith.truncf %165 : vector<24x128xf32> to vector<24x128xbf16>
    %cst_107 = arith.constant dense<0.000000e+00> : vector<2x128xf32>
    %167 = tpu.matmul %3, %166, %cst_107 {dimension_numbers = #tpu.dot_dimension_numbers<[1], [0], [0], [1], [0, 0, 1, 1], [], []>} : vector<2x24xbf16>, vector<24x128xbf16>, vector<2x128xf32> -> vector<2x128xf32>
    %c2_108 = arith.constant 2 : index
    %c0_109 = arith.constant 0 : index
    %c0_110 = arith.constant 0 : index
    %168 = vector.load %arg11[%c2_108, %c0_109, %c0_110] : memref<3x1x128xf32, #tpu.memory_space<vmem>>, vector<1x1x128xf32>
    %169 = vector.shape_cast %168 : vector<1x1x128xf32> to vector<1x128xf32>
    %170 = vector.broadcast %169 : vector<1x128xf32> to vector<2x128xf32>
    %171 = arith.mulf %167, %170 : vector<2x128xf32>
    %cst_111 = arith.constant dense<0.000000e+00> : vector<2xf32>
    %172 = vector.multi_reduction <add>, %171, %cst_111 [1] : vector<2x128xf32> to vector<2xf32>
    %173 = vector.shape_cast %172 : vector<2xf32> to vector<2x1xf32>
    %c2_112 = arith.constant 2 : index
    %c0_113 = arith.constant 0 : index
    %c0_114 = arith.constant 0 : index
    %174 = vector.load %arg12[%c2_112, %c0_113, %c0_114] : memref<3x1x1xf32, #tpu.memory_space<vmem>>, vector<1x1x1xf32>
    %175 = vector.shape_cast %174 : vector<1x1x1xf32> to vector<1x1xf32>
    %176 = vector.broadcast %175 : vector<1x1xf32> to vector<2x1xf32>
    %177 = arith.addf %173, %176 : vector<2x1xf32>
    %c2_115 = arith.constant 2 : index
    %c0_116 = arith.constant 0 : index
    %c0_117 = arith.constant 0 : index
    %178 = vector.load %arg13[%c2_115, %c0_116, %c0_117] : memref<3x1x128xf32, #tpu.memory_space<vmem>>, vector<1x1x128xf32>
    %179 = vector.shape_cast %178 : vector<1x1x128xf32> to vector<1x128xf32>
    %180 = vector.broadcast %177 : vector<2x1xf32> to vector<2x128xf32>
    %181 = vector.broadcast %179 : vector<1x128xf32> to vector<2x128xf32>
    %182 = arith.mulf %180, %181 : vector<2x128xf32>
    %183 = arith.addf %115, %182 : vector<2x128xf32>
    %184 = arith.negf %183 : vector<2x128xf32>
    %185 = math.exp %184 : vector<2x128xf32>
    %cst_118 = arith.constant 1.000000e+00 : f32
    %186 = vector.broadcast %cst_118 : f32 to vector<2x128xf32>
    %187 = arith.addf %186, %185 : vector<2x128xf32>
    %188 = arith.divf %186, %187 : vector<2x128xf32>
    %c0_119 = arith.constant 0 : index
    %c0_120 = arith.constant 0 : index
    %189 = vector.load %arg15[%c0_119, %c0_120] : memref<2x128xf32, #tpu.memory_space<vmem>>, vector<2x128xf32>
    tpu.vector_store %arg15[%c0_119, %c0_120], %188 {strides = array<i32>} : memref<2x128xf32, #tpu.memory_space<vmem>>, vector<2x128xf32>,
    return
  }
  func.func @transform_0(%arg0: i32) -> (i32, i32) {
    %c0_i32 = arith.constant 0 : i32
    %c0_i32_0 = arith.constant 0 : i32
    %c0_i32_1 = arith.constant 0 : i32
    return %c0_i32, %c0_i32_0 : i32, i32
  }
  func.func @transform_1(%arg0: i32) -> (i32, i32) {
    %c0_i32 = arith.constant 0 : i32
    %c0_i32_0 = arith.constant 0 : i32
    %c0_i32_1 = arith.constant 0 : i32
    return %c0_i32, %c0_i32_0 : i32, i32
  }
  func.func @transform_2(%arg0: i32) -> (i32, i32, i32) {
    %c0_i32 = arith.constant 0 : i32
    %c0_i32_0 = arith.constant 0 : i32
    %c0_i32_1 = arith.constant 0 : i32
    %c0_i32_2 = arith.constant 0 : i32
    return %c0_i32, %c0_i32_0, %c0_i32_1 : i32, i32, i32
  }
  func.func @transform_3(%arg0: i32) -> (i32, i32, i32) {
    %c0_i32 = arith.constant 0 : i32
    %c0_i32_0 = arith.constant 0 : i32
    %c0_i32_1 = arith.constant 0 : i32
    %c0_i32_2 = arith.constant 0 : i32
    return %c0_i32, %c0_i32_0, %c0_i32_1 : i32, i32, i32
  }
  func.func @transform_4(%arg0: i32) -> (i32, i32, i32) {
    %c0_i32 = arith.constant 0 : i32
    %c0_i32_0 = arith.constant 0 : i32
    %c0_i32_1 = arith.constant 0 : i32
    %c0_i32_2 = arith.constant 0 : i32
    return %c0_i32, %c0_i32_0, %c0_i32_1 : i32, i32, i32
  }
  func.func @transform_5(%arg0: i32) -> (i32, i32, i32) {
    %c0_i32 = arith.constant 0 : i32
    %c0_i32_0 = arith.constant 0 : i32
    %c0_i32_1 = arith.constant 0 : i32
    %c0_i32_2 = arith.constant 0 : i32
    return %c0_i32, %c0_i32_0, %c0_i32_1 : i32, i32, i32
  }
  func.func @transform_6(%arg0: i32) -> (i32, i32, i32) {
    %c0_i32 = arith.constant 0 : i32
    %c0_i32_0 = arith.constant 0 : i32
    %c0_i32_1 = arith.constant 0 : i32
    %c0_i32_2 = arith.constant 0 : i32
    return %c0_i32, %c0_i32_0, %c0_i32_1 : i32, i32, i32
  }
  func.func @transform_7(%arg0: i32) -> (i32, i32, i32) {
    %c0_i32 = arith.constant 0 : i32
    %c0_i32_0 = arith.constant 0 : i32
    %c0_i32_1 = arith.constant 0 : i32
    %c0_i32_2 = arith.constant 0 : i32
    return %c0_i32, %c0_i32_0, %c0_i32_1 : i32, i32, i32
  }
  func.func @transform_8(%arg0: i32) -> (i32, i32, i32) {
    %c0_i32 = arith.constant 0 : i32
    %c0_i32_0 = arith.constant 0 : i32
    %c0_i32_1 = arith.constant 0 : i32
    %c0_i32_2 = arith.constant 0 : i32
    return %c0_i32, %c0_i32_0, %c0_i32_1 : i32, i32, i32
  }
  func.func @transform_9(%arg0: i32) -> (i32, i32) {
    %c0_i32 = arith.constant 0 : i32
    %c0_i32_0 = arith.constant 0 : i32
    %c0_i32_1 = arith.constant 0 : i32
    return %c0_i32, %c0_i32_0 : i32, i32
  }
  func.func @transform_10(%arg0: i32) -> (i32, i32, i32) {
    %c0_i32 = arith.constant 0 : i32
    %c0_i32_0 = arith.constant 0 : i32
    %c0_i32_1 = arith.constant 0 : i32
    %c0_i32_2 = arith.constant 0 : i32
    return %c0_i32, %c0_i32_0, %c0_i32_1 : i32, i32, i32
  }
  func.func @transform_11(%arg0: i32) -> (i32, i32, i32) {
    %c0_i32 = arith.constant 0 : i32
    %c0_i32_0 = arith.constant 0 : i32
    %c0_i32_1 = arith.constant 0 : i32
    %c0_i32_2 = arith.constant 0 : i32
    return %c0_i32, %c0_i32_0, %c0_i32_1 : i32, i32, i32
  }
  func.func @transform_12(%arg0: i32) -> (i32, i32, i32) {
    %c0_i32 = arith.constant 0 : i32
    %c0_i32_0 = arith.constant 0 : i32
    %c0_i32_1 = arith.constant 0 : i32
    %c0_i32_2 = arith.constant 0 : i32
    return %c0_i32, %c0_i32_0, %c0_i32_1 : i32, i32, i32
  }
  func.func @transform_13(%arg0: i32) -> (i32, i32) {
    %c0_i32 = arith.constant 0 : i32
    %c0_i32_0 = arith.constant 0 : i32
    %c0_i32_1 = arith.constant 0 : i32
    return %c0_i32, %c0_i32_0 : i32, i32
  }
  func.func @transform_14(%arg0: i32) -> (i32, i32) {
    %c0_i32 = arith.constant 0 : i32
    %c0_i32_0 = arith.constant 0 : i32
    %c0_i32_1 = arith.constant 0 : i32
    return %c0_i32, %c0_i32_0 : i32, i32
  }
}

</mosaic_0001>

<bundles_post_ra>
// kernel: moce_graph_pred_forward.1
= control target key start
LH: loop header
LB: loop body
LE: loop exit
PB: predicated region body
PF: predicated region fallthrough
CT: control target
= control target key end

     0   :  { %19 = vsyncpa [#allocation3], 0  ;;  %s2867_s0 = inlined_call_operand.hbm [shape: f32[24,24], index: 0, kind: input, shape index: {}]   ;;  %s2868_s1 = inlined_call_operand.vmem [shape: f32[24,128], index: 1, kind: input, shape index: {}]   ;;  %s2869_s2 = inlined_call_operand.vmem [shape: f32[3,24,128], index: 2, kind: input, shape index: {}]   ;;  %s2870_s3 = inlined_call_operand.vmem [shape: bf16[3,128,256], index: 3, kind: input, shape index: {}]   ;;  %s2871_s4 = inlined_call_operand.vmem [shape: f32[3,1,256], index: 4, kind: input, shape index: {}]   ;;  %s2872_s5 = inlined_call_operand.vmem [shape: bf16[3,256,128], index: 5, kind: input, shape index: {}]   ;;  %s2873_s6 = inlined_call_operand.vmem [shape: f32[3,1,128], index: 6, kind: input, shape index: {}]   ;;  %s2874_s7 = inlined_call_operand.vmem [shape: f32[3,1,128], index: 7, kind: input, shape index: {}]   ;;  %s2875_s8 = inlined_call_operand.vmem [shape: f32[3,1,128], index: 8, kind: input, shape index: {}]   ;;  %s2876_s9 = inlined_call_operand.vmem [shape: f32[2,24], index: 9, kind: input, shape index: {}]   ;;  %s2877_s10 = inlined_call_operand.vmem [shape: f32[3,1,128], index: 10, kind: input, shape index: {}]   ;;  %s2878_s11 = inlined_call_operand.vmem [shape: f32[3,1,1], index: 11, kind: input, shape index: {}]   ;;  %s2879_s12 = inlined_call_operand.vmem [shape: f32[3,1,128], index: 12, kind: input, shape index: {}]   ;;  %s2880_s13 = inlined_call_operand.vmem [shape: f32[1,128], index: 13, kind: input, shape index: {}]   ;;  %s2881_s14 = inlined_call_operand.hbm [shape: f32[2,128], index: 14, kind: output, shape index: {}]  }
   0x1   :  { %20 = vsyncpa [#allocation4], 0  ;;  %s2273_s29 = smov [#allocation2]   ;;  %s2225_s17 = scalar_lea.hbm %s2867_s0, 384 }
   0x2   :  { %s26_s30 = sshll.u32 %s2273_s29, 4  ;;  %p2226_p0 = scmp.ne.s32.totalorder %s2867_s0, %s2225_s17  ;;  %s27_s30 = int_to_ptr.vmem [resolvable:$true] %s26_s30 }
   0x3   :  { %p2229_p1 = scmp.lt.u32.totalorder %s2225_s17, %s2867_s0 }
   0x5   :  { %p2231_p2 = pnand %p2229_p1, %p2226_p0 }
   0x7   :  { %2234 = shalt.err (!%p2231_p2)
}
   0x8   :  { %s2235_s22 = scalar_lea.vmem %s27_s30, 384  ;;  %p2240_p4 = scmp.lt.s32.totalorder %s27_s30, %s27_s30 }
   0x9   :  { %p2236_p3 = scmp.ne.s32.totalorder %s27_s30, %s2235_s22  ;;  %p2241_p5 = scmp.lt.s32.totalorder %s2235_s22, %s2235_s22 }
   0xb   :  { %p2242_p6 = por %p2241_p5, %p2240_p4 }
   0xd   :  { %p2243_p7 = pnand %p2242_p6, %p2236_p3 }
   0xf   :  { %2246 = shalt.err (!%p2243_p7)
}
  0x10   :  { %s2274_s23 = smov 128   ;;  %s2275_s24 = smov 8  }
  0x11   :  { %32 = dma.hbm_to_vmem [thread:$0]  %s2867_s0, 384, %s27_s30, [#allocation3], %s2274_s23, %s2274_s23, %s2275_s24  }
  0x12   :  { %2269 = dma.done.wait [#allocation3], 384  }
  0x13   :  { %2270 = vsyncadd [#allocation3], 4294966912  ;;  %v70_v0 = vld [vmem:[%s2868_s1] sm:$0xff]  ;;  %v71_v1 = vld [vmem:[%s2868_s1 + $0x8] sm:$0xff]  ;;  %vm79_vm0 = vcmask 195584   ;;  %vm86_vm1 = vcmask 1043456   ;;  %v158_v56 = vlaneseq }
  0x14   :  { %v72_v2 = vld [vmem:[%s2868_s1 + $0x10] sm:$0xff]  ;;  %v74_v3 = vpack.c.bf16 %v71_v1, %v70_v0  ;;  %v63_v5 = vld [vmem:[#allocation2] sm:$0xff]  ;;  %v64_v6 = vld [vmem:[#allocation2 + $0x8] sm:$0xff]  ;;  %v2276_v27 = vmov 0   ;;  %vm2278_vm2 = vmmov 0   ;;  %vm548_vm3 = vcmask 1041408  }
  0x15   :  { %v75_v4 = vpack.c.bf16 %v72_v2, %v72_v2  ;;  %v2376_v7 = vpack.c.bf16 %v64_v6, %v63_v5  ;;  %v2097_v8 = vld [vmem:[%s2870_s3 + $0x4] ss:$8 sps:$4 sm:$0xff]   ;;  %v2099_v9 = vld [vmem:[%s2870_s3] ss:$8 sps:$4 sm:$0xff]   ;;  %v2100_v11 = vld [vmem:[%s2870_s3 + $0x14] ss:$8 sps:$4 sm:$0xff]   ;;  %280 = vmatprep.mubr.bf16.mxu1 %v2276_v27  ;;  %2096 = vset.pattern.permute.xlu0 %v2276_v27 }
  0x16   :  { %2037 = vmatprep.subr.bf16.mxu0 %v74_v3  ;;  %v65_v10 = vld [vmem:[#allocation2 + $0x10] sm:$0xff]  ;;  %248 = vmatprep.subr.bf16.mxu1 %v2097_v8  ;;  %v2102_v13 = vld [vmem:[%s2870_s3 + $0x10] ss:$8 sps:$4 sm:$0xff]   ;;  %v2106_v17 = vld [vmem:[%s2870_s3 + $0x34] ss:$8 sps:$4 sm:$0xff]   ;;  %v159_v57 = vshrl.u32 %v158_v56, 7 }
  0x17   :  { %2038 = vmatpush3.bf16.msra.mxu0 %v74_v3  ;;  %2041 = vmatprep.mubr.msk.bf16.mxu0 %vm79_vm0, %v2376_v7  ;;  %v88_v12 = vsel %vm86_vm1, %v75_v4, 0  ;;  %v2394_v14 = vpack.c.bf16 %v65_v10, %v65_v10  ;;  %v2103_v15 = vld [vmem:[%s2870_s3 + $0x24] ss:$8 sps:$4 sm:$0xff]   ;;  %v2105_v16 = vld [vmem:[%s2870_s3 + $0x20] ss:$8 sps:$4 sm:$0xff]   ;;  %v2125_v32 = vld [vmem:[%s2872_s5 + $0x50] sm:$0xff]  }
  0x18   :  { %2085 = vmatprep.subr.msk.bf16.mxu0 %vm86_vm1, %v75_v4  ;;  %249 = vmatpush1.bf16.msra.mxu1 %v2099_v9  ;;  %v2108_v18 = vld [vmem:[%s2870_s3 + $0x30] ss:$8 sps:$4 sm:$0xff]   ;;  %v2109_v19 = vld [vmem:[%s2870_s3 + $0x44] ss:$8 sps:$4 sm:$0xff]   ;;  %v2111_v20 = vld [vmem:[%s2870_s3 + $0x40] ss:$8 sps:$4 sm:$0xff]  }
  0x19   :  { %250 = vmatprep.subr.bf16.mxu1 %v2100_v11  ;;  %v2112_v21 = vld [vmem:[%s2870_s3 + $0x54] ss:$8 sps:$4 sm:$0xff]   ;;  %v2114_v22 = vld [vmem:[%s2870_s3 + $0x50] ss:$8 sps:$4 sm:$0xff]   ;;  %v2115_v23 = vld [vmem:[%s2870_s3 + $0x64] ss:$8 sps:$4 sm:$0xff]   ;;  %2095 = vset.pattern.permute.xlu1 %v2276_v27 }
  0x1a   :  { %v2117_v24 = vld [vmem:[%s2870_s3 + $0x60] ss:$8 sps:$4 sm:$0xff]   ;;  %v2118_v25 = vld [vmem:[%s2870_s3 + $0x74] ss:$8 sps:$4 sm:$0xff]   ;;  %v2120_v26 = vld [vmem:[%s2870_s3 + $0x70] ss:$8 sps:$4 sm:$0xff]  }
  0x1b   :  { %2040 = vmatpush3.bf16.msra.mxu0 %v88_v12  ;;  %v2121_v28 = vld [vmem:[%s2872_s5 + $0x40] sm:$0xff]   ;;  %v2123_v30 = vld [vmem:[%s2872_s5 + $0x48] sm:$0xff]   ;;  %v2126_v33 = vld [vmem:[%s2872_s5 + $0x10] sm:$0xff]   ;;  %v2495_v58 = vsub.s32 0, %v159_v57  ;;  %v2500_v60 = vsub.s32 1, %v159_v57 }
  0x1c   :  { %251 = vmatpush1.bf16.msra.mxu1 %v2102_v13  ;;  %v2122_v29 = vld [vmem:[%s2872_s5] sm:$0xff]   ;;  %1936 = vmatprep.subr.bf16.mxu0 %v2121_v28  ;;  %v2124_v31 = vld [vmem:[%s2872_s5 + $0x8] sm:$0xff]   ;;  %v2127_v34 = vld [vmem:[%s2872_s5 + $0x58] sm:$0xff]  }
  0x1d   :  { %252 = vmatprep.subr.bf16.mxu1 %v2103_v15  ;;  %v2128_v35 = vld [vmem:[%s2872_s5 + $0x18] sm:$0xff]   ;;  %v2129_v36 = vld [vmem:[%s2872_s5 + $0x60] sm:$0xff]   ;;  %v2131_v38 = vld [vmem:[%s2872_s5 + $0x68] sm:$0xff]  }
  0x1e   :  { %2042 = vmatmul.mubr.msk.bf16.vlgmr.msra.gmra.mrb[0].mxu0 %vm79_vm0, %v2394_v14  ;;  %v2130_v37 = vld [vmem:[%s2872_s5 + $0x20] sm:$0xff]   ;;  %v77_v42 = vld [vmem:[%s2869_s2 + $0x8] sm:$0xff]  ;;  %v78_v48 = vld [vmem:[%s2869_s2 + $0x10] sm:$0xff] }
  0x1f   :  { %1937 = vmatpush3.bf16.msra.mxu0 %v2122_v29  ;;  %v76_v41 = vld [vmem:[%s2869_s2] sm:$0xff]  ;;  %v2132_v51 = vld [vmem:[%s2872_s5 + $0x28] sm:$0xff]   ;;  %v2133_v52 = vld [vmem:[%s2872_s5 + $0x70] sm:$0xff]  }
  0x20   :  { %253 = vmatpush1.bf16.msra.mxu1 %v2105_v16  ;;  %1938 = vmatprep.subr.bf16.mxu0 %v2123_v30  ;;  %v2134_v53 = vld [vmem:[%s2872_s5 + $0x30] sm:$0xff]   ;;  %v2135_v54 = vld [vmem:[%s2872_s5 + $0x78] sm:$0xff]   ;;  %v156_v59 = vld [vmem:[%s2871_s4] sm:$0x3] }
  0x21   :  { %254 = vmatprep.subr.bf16.mxu1 %v2106_v17  ;;  %v2136_v55 = vld [vmem:[%s2872_s5 + $0x38] sm:$0xff]   ;;  %v161_v61 = vrot.slane %v156_v59, %v2495_v58  ;;  %v165_v62 = vrot.slane %v156_v59, %v2500_v60  ;;  %v1717_v28 = vld [vmem:[%s2873_s6] ss:$0 sm:$0xff] }
  0x22   :  { %v2137_v56 = vld [vmem:[%s2870_s3 + $0x80] ss:$8 sps:$4 sm:$0xff]  }
  0x23   :  { %1939 = vmatpush3.bf16.msra.mxu0 %v2124_v31 }
  0x24   :  { %255 = vmatpush1.bf16.msra.mxu1 %v2108_v18  ;;  %1940 = vmatprep.subr.bf16.mxu0 %v2125_v32 }
  0x25   :  { %256 = vmatprep.subr.bf16.mxu1 %v2109_v19 }
  0x27   :  { %1941 = vmatpush3.bf16.msra.mxu0 %v2126_v33 }
  0x28   :  { %257 = vmatpush1.bf16.msra.mxu1 %v2111_v20  ;;  %1942 = vmatprep.subr.bf16.mxu0 %v2127_v34 }
  0x29   :  { %258 = vmatprep.subr.bf16.mxu1 %v2112_v21 }
  0x2b   :  { %1943 = vmatpush3.bf16.msra.mxu0 %v2128_v35 }
  0x2c   :  { %259 = vmatpush1.bf16.msra.mxu1 %v2114_v22  ;;  %1944 = vmatprep.subr.bf16.mxu0 %v2129_v36 }
  0x2d   :  { %260 = vmatprep.subr.bf16.mxu1 %v2115_v23 }
  0x2f   :  { %1945 = vmatpush3.bf16.msra.mxu0 %v2130_v37 }
  0x30   :  { %261 = vmatpush1.bf16.msra.mxu1 %v2117_v24  ;;  %1946 = vmatprep.subr.bf16.mxu0 %v2131_v38 }
  0x31   :  { %262 = vmatprep.subr.bf16.mxu1 %v2118_v25  ;;  %v2277_v25 = vmov 0.0  }
  0x33   :  { %1947 = vmatpush3.bf16.msra.mxu0 %v2132_v51  ;;  %v2139_v51 = vld [vmem:[%s2870_s3 + $0x84] ss:$8 sps:$4 sm:$0xff]  }
  0x34   :  { %263 = vmatpush1.bf16.msra.mxu1 %v2120_v26  ;;  %1948 = vmatprep.subr.bf16.mxu0 %v2133_v52 }
  0x35   :  { %2045 = vmatprep.subr.bf16.mxu1 %v2277_v25 }
  0x37   :  { %1949 = vmatpush3.bf16.msra.mxu0 %v2134_v53 }
  0x38   :  { %1950 = vmatprep.subr.bf16.mxu0 %v2135_v54 }
  0x3b   :  { %1951 = vmatpush3.bf16.msra.mxu0 %v2136_v55 }
  0xf1   :  { %v2043_v39 = vpop.f32.mrb[0].mxu0 }
  0xf2   :  { %v124_v40 = vpop.f32.mrb[1].mxu0  ;;  %v133_v49 = vadd.f32 %v2043_v39, %v78_v48 }
  0xf3   :  { %v2044_v43 = vpop.f32.mrb[2].mxu0  ;;  %v125_v45 = vadd.f32 %v124_v40, %v76_v41 }
  0xf4   :  { %v127_v44 = vpop.f32.mrb[3].mxu0  ;;  %v139_v50 = vpack.c.bf16 %v133_v49, %v133_v49 }
  0xf5   :  { %v128_v46 = vadd.f32 %v127_v44, %v77_v42 }
  0xf7   :  { %v138_v47 = vpack.c.bf16 %v128_v46, %v125_v45 }
  0xf9   :  { %281 = vmatmul.mubr.bf16.vlgmr.msra.gmra.mrb[0].mxu1 %v138_v47  ;;  %v68_v47 = vld [vmem:[%s2876_s9] sm:$0x3] }
  0xfa   :  { %290 = vmatprep.mubr.bf16.mxu1 %v2276_v27  ;;  %v2532_v55 = vpack.c.bf16 %v68_v47, %v68_v47 }
 0x101   :  { %291 = vmatmul.mubr.bf16.gmra.mrb[4].mxu1 %v139_v50 }
 0x102   :  { %2049 = vmatprep.mubr.msk.bf16.mxu1 %vm2278_vm2, %v2277_v25 }
 0x1cc   :  { %v282_v63 = vpop.f32.mrb[0].mxu1 }
 0x1cd   :  { %v283_v0 = vadd.f32 %v282_v63, %v161_v61  ;;  %v284_v1 = vpop.f32.mrb[1].mxu1 }
 0x1ce   :  { %v285_v2 = vadd.f32 %v284_v1, %v165_v62  ;;  %v286_v3 = vpop.f32.mrb[2].mxu1 }
 0x1cf   :  { %v287_v4 = vadd.f32 %v286_v3, %v161_v61  ;;  %v288_v5 = vpop.f32.mrb[3].mxu1  ;;  %v299_v8 = vmax.f32 %v283_v0, 0.0  ;;  %v2140_v0 = vld [vmem:[%s2870_s3 + $0x90] ss:$8 sps:$4 sm:$0xff]   ;;  %v2145_v3 = vld [vmem:[%s2870_s3 + $0xa4] ss:$8 sps:$4 sm:$0xff]  }
 0x1d0   :  { %v289_v6 = vadd.f32 %v288_v5, %v165_v62  ;;  %v300_v10 = vmax.f32 %v285_v2, 0.0 }
 0x1d1   :  { %v301_v9 = vmax.f32 %v287_v4, 0.0 }
 0x1d2   :  { %v302_v11 = vmax.f32 %v289_v6, 0.0  ;;  %v2143_v6 = vld [vmem:[%s2870_s3 + $0xa0] ss:$8 sps:$4 sm:$0xff]  }
 0x1d3   :  { %v305_v12 = vpack.c.bf16 %v301_v9, %v299_v8 }
 0x1d4   :  { %v306_v13 = vpack.c.bf16 %v302_v11, %v300_v10  ;;  %v292_v15 = vpop.f32.mrb[4].mxu1  ;;  %v2148_v10 = vld [vmem:[%s2870_s3 + $0xb4] ss:$8 sps:$4 sm:$0xff]  }
 0x1d5   :  { %v293_v16 = vadd.f32 %v292_v15, %v161_v61  ;;  %v294_v17 = vpop.f32.mrb[5].mxu1  ;;  %v2142_v61 = vld [vmem:[%s2870_s3 + $0x94] ss:$8 sps:$4 sm:$0xff]  }
 0x1d6   :  { %v295_v18 = vadd.f32 %v294_v17, %v165_v62  ;;  %v296_v19 = vpop.f32.mrb[6].mxu1  ;;  %476 = vmatprep.mubr.bf16.mxu0 %v306_v13  ;;  %v2146_v13 = vld [vmem:[%s2870_s3 + $0xb0] ss:$8 sps:$4 sm:$0xff]   ;;  %v2151_v17 = vld [vmem:[%s2870_s3 + $0xc4] ss:$8 sps:$4 sm:$0xff]  }
 0x1d7   :  { %v297_v20 = vpop.f32.mrb[7].mxu1  ;;  %477 = vmatmul.mubr.bf16.vlgmr.msra.gmra.mrb[4].mxu0 %v305_v12  ;;  %v303_v22 = vmax.f32 %v293_v16, 0.0  ;;  %v2149_v19 = vld [vmem:[%s2870_s3 + $0xc0] ss:$8 sps:$4 sm:$0xff]  }
 0x1d8   :  { %v304_v21 = vmax.f32 %v295_v18, 0.0 }
 0x1d9   :  { %v307_v24 = vpack.c.bf16 %v303_v22, %v303_v22  ;;  %v2152_v22 = vld [vmem:[%s2870_s3 + $0xd0] ss:$8 sps:$4 sm:$0xff]  }
 0x1da   :  { %v308_v23 = vpack.c.bf16 %v304_v21, %v304_v21  ;;  %v2154_v21 = vld [vmem:[%s2870_s3 + $0xd4] ss:$8 sps:$4 sm:$0xff]  }
 0x1dc   :  { %484 = vmatprep.mubr.bf16.mxu0 %v308_v23  ;;  %v604_v23 = vld [vmem:[%s2874_s7] sm:$0x1] }
 0x1df   :  { %485 = vmatmul.mubr.bf16.gmra.mrb[8].mxu0 %v307_v24 }
 0x1e0   :  { %2057 = vmatprep.mubr.msk.bf16.mxu0 %vm79_vm0, %v2376_v7 }
 0x2aa   :  { %v1952_v26 = vpop.f32.mrb[4].mxu0 }
 0x2ab   :  { %v1953_v29 = vpop.f32.mrb[5].mxu0 }
 0x2ac   :  { %v1954_v30 = vadd.f32 %v1953_v29, %v1952_v26  ;;  %v1955_v31 = vpop.f32.mrb[6].mxu0 }
 0x2ad   :  { %v1956_v32 = vpop.f32.mrb[7].mxu0 }
 0x2ae   :  { %v2512_v33 = vadd.f32 %v1954_v30, %v1717_v28  ;;  %v1957_v34 = vadd.f32 %v1956_v32, %v1955_v31 }
 0x2b0   :  { %v2514_v35 = vadd.f32 %v1957_v34, %v1717_v28  ;;  %v590_v36 = vmul.f32 %v2512_v33, %v2512_v33 }
 0x2b2   :  { %v580_v37 = vadd.f32 %v2514_v35, %v2512_v33  ;;  %v591_v38 = vmul.f32 %v2514_v35, %v2514_v35  ;;  %v1958_v39 = vpop.f32.mrb[8].mxu0  ;;  %v492_v40 = vpack.c.bf16 %v2514_v35, %v2512_v33 }
 0x2b3   :  { %v1959_v41 = vpop.f32.mrb[9].mxu0 }
 0x2b4   :  { %v593_v42 = vadd.f32 %v591_v38, %v590_v36  ;;  %v1960_v43 = vadd.f32 %v1959_v41, %v1958_v39  ;;  %v1961_v44 = vpop.f32.mrb[10].mxu0  ;;  %2046 = vmatpush3.bf16.msra.mxu1 %v492_v40 }
 0x2b5   :  { %v1962_v45 = vpop.f32.mrb[11].mxu0  ;;  %2047 = vmatprep.subr.bf16.mxu1 %v2277_v25 }
 0x2b6   :  { %v487_v46 = vadd.f32 %v1960_v43, %v1717_v28  ;;  %v608_v28 = vld [vmem:[%s2875_s8] sm:$0x1] }
 0x2b8   :  { %v581_v48 = vadd.f32 %v580_v37, %v487_v46  ;;  %v592_v49 = vmul.f32 %v487_v46, %v487_v46  ;;  %v493_v50 = vpack.c.bf16 %v487_v46, %v487_v46 }
 0x2ba   :  { %v582_v52 = vrot.slane %v581_v48, 4  ;;  %v594_v53 = vadd.f32 %v593_v42, %v592_v49  ;;  %v498_v54 = vsel %vm86_vm1, %v493_v50, 0  ;;  %v2161_v49 = vld [vmem:[%s2872_s5 + $0xc0] sm:$0xff]  }
 0x2bb   :  { %2048 = vmatpush3.bf16.msra.mxu1 %v498_v54  ;;  %v2162_v50 = vld [vmem:[%s2872_s5 + $0x80] sm:$0xff]   ;;  %v2166_v54 = vld [vmem:[%s2872_s5 + $0x90] sm:$0xff]  }
 0x2bc   :  { %v583_v57 = vadd.f32 %v582_v52, %v581_v48  ;;  %v595_v59 = vrot.slane %v594_v53, 4  ;;  %801 = vmatprep.subr.bf16.mxu1 %v2139_v51  ;;  %v2158_v48 = vld [vmem:[%s2870_s3 + $0xf0] ss:$8 sps:$4 sm:$0xff]   ;;  %v2163_v51 = vld [vmem:[%s2872_s5 + $0xc8] sm:$0xff]  }
 0x2bd   :  { %v2164_v52 = vld [vmem:[%s2872_s5 + $0x88] sm:$0xff]  }
 0x2be   :  { %v584_v62 = vrot.slane %v583_v57, 2  ;;  %v596_v63 = vadd.f32 %v595_v59, %v594_v53  ;;  %2050 = vmatmul.mubr.msk.bf16.vlgmr.msra.gmra.mrb[8].mxu1 %vm79_vm0, %v2532_v55  ;;  %v2165_v53 = vld [vmem:[%s2872_s5 + $0xd0] sm:$0xff]   ;;  %v2169_v59 = vld [vmem:[%s2872_s5 + $0xe0] sm:$0xff]  }
 0x2bf   :  { %802 = vmatpush1.bf16.msra.mxu1 %v2137_v56  ;;  %833 = vmatprep.mubr.bf16.mxu1 %v2276_v27  ;;  %v2167_v56 = vld [vmem:[%s2872_s5 + $0xd8] sm:$0xff]  }
 0x2c0   :  { %v585_v1 = vadd.f32 %v584_v62, %v583_v57  ;;  %v597_v2 = vrot.slane %v596_v63, 2  ;;  %803 = vmatprep.subr.bf16.mxu1 %v2142_v61  ;;  %v2168_v57 = vld [vmem:[%s2872_s5 + $0x98] sm:$0xff]   ;;  %v2170_v61 = vld [vmem:[%s2872_s5 + $0xa0] sm:$0xff]   ;;  %v2171_v62 = vld [vmem:[%s2872_s5 + $0xe8] sm:$0xff]  }
 0x2c2   :  { %v586_v4 = vrot.slane %v585_v1, 1  ;;  %v598_v5 = vadd.f32 %v597_v2, %v596_v63  ;;  %v1735_v63 = vld [vmem:[%s2877_s10] ss:$0 sm:$0xff] }
 0x2c3   :  { %804 = vmatpush1.bf16.msra.mxu1 %v2140_v0 }
 0x2c4   :  { %v587_v8 = vadd.f32 %v586_v4, %v585_v1  ;;  %v599_v9 = vrot.slane %v598_v5, 1  ;;  %805 = vmatprep.subr.bf16.mxu1 %v2145_v3 }
 0x2c6   :  { %v600_v11 = vadd.f32 %v599_v9, %v598_v5  ;;  %v589_v12 = vmul.f32 0.041666668, %v587_v8  ;;  %v1739_v9 = vld [vmem:[%s2869_s2 + $0x18] sm:$0xff] }
 0x2c7   :  { %806 = vmatpush1.bf16.msra.mxu1 %v2143_v6 }
 0x2c8   :  { %v601_v15 = vmul.f32 0.041666668, %v600_v11  ;;  %v602_v16 = vmul.f32 %v589_v12, %v589_v12  ;;  %807 = vmatprep.subr.bf16.mxu1 %v2148_v10  ;;  %v1740_v10 = vld [vmem:[%s2869_s2 + $0x20] sm:$0xff] }
 0x2ca   :  { %v603_v18 = vsub.f32 %v601_v15, %v602_v16 }
 0x2cb   :  { %808 = vmatpush1.bf16.msra.mxu1 %v2146_v13 }
 0x2cc   :  { %v605_v20 = vadd.f32 1e-05, %v603_v18  ;;  %809 = vmatprep.subr.bf16.mxu1 %v2151_v17  ;;  %v1741_v17 = vld [vmem:[%s2869_s2 + $0x28] sm:$0xff] }
 0x2ce   :  { %2217 = vrsqrt.f32 %v605_v20  ;;  %v2172_v20 = vld [vmem:[%s2872_s5 + $0xa8] sm:$0xff]  }
 0x2cf   :  { %810 = vmatpush1.bf16.msra.mxu1 %v2149_v19 }
 0x2d0   :  { %811 = vmatprep.subr.bf16.mxu1 %v2154_v21  ;;  %v2173_v21 = vld [vmem:[%s2872_s5 + $0xf0] sm:$0xff]  }
 0x2d3   :  { %812 = vmatpush1.bf16.msra.mxu1 %v2152_v22  ;;  %v2174_v22 = vld [vmem:[%s2872_s5 + $0xb0] sm:$0xff]  }
 0x2d8   :  { %v2218_v24 = vpop.eup %2217 }
 0x2d9   :  { %v607_v26 = vmul.f32 %v2218_v24, %v604_v23  ;;  %v2175_v23 = vld [vmem:[%s2872_s5 + $0xf8] sm:$0xff]  }
 0x2da   :  { %v2176_v24 = vld [vmem:[%s2872_s5 + $0xb8] sm:$0xff]  }
 0x2db   :  { %v609_v29 = vmul.f32 %v607_v26, %v589_v12  ;;  %v615_v30 = vrot.slane %v607_v26, %v2495_v58  ;;  %v1760_v26 = vld [vmem:[%s2871_s4 + $0x2] sm:$0x3] }
 0x2dd   :  { %v610_v31 = vsub.f32 %v608_v28, %v609_v29  ;;  %v617_v32 = vmul.f32 %v615_v30, %v2512_v33  ;;  %v618_v34 = vmul.f32 %v615_v30, %v2514_v35  ;;  %v619_v36 = vmul.f32 %v615_v30, %v487_v46  ;;  %v2157_v33 = vld [vmem:[%s2870_s3 + $0xe4] ss:$8 sps:$4 sm:$0xff]   ;;  %v2155_v35 = vld [vmem:[%s2870_s3 + $0xe0] ss:$8 sps:$4 sm:$0xff]   ;;  %v2160_v46 = vld [vmem:[%s2870_s3 + $0xf4] ss:$8 sps:$4 sm:$0xff]  }
 0x2de   :  { %813 = vmatprep.subr.bf16.mxu1 %v2157_v33  ;;  %v714_v28 = vrot.slane %v1760_v26, %v2495_v58  ;;  %v718_v29 = vrot.slane %v1760_v26, %v2500_v60 }
 0x2df   :  { %v624_v37 = vrot.slane %v610_v31, %v2495_v58  ;;  %814 = vmatpush1.bf16.msra.mxu1 %v2155_v35 }
 0x2e0   :  { %815 = vmatprep.subr.bf16.mxu1 %v2160_v46 }
 0x2e1   :  { %v626_v38 = vadd.f32 %v624_v37, %v617_v32  ;;  %v627_v39 = vadd.f32 %v624_v37, %v618_v34  ;;  %v628_v40 = vadd.f32 %v624_v37, %v619_v36 }
 0x2e3   :  { %v629_v41 = vmax.f32 %v626_v38, 0.0  ;;  %v630_v42 = vmax.f32 %v627_v39, 0.0  ;;  %v631_v43 = vmax.f32 %v628_v40, 0.0  ;;  %816 = vmatpush1.bf16.msra.mxu1 %v2158_v48 }
 0x2e4   :  { %2061 = vmatprep.subr.bf16.mxu1 %v2277_v25 }
 0x2e5   :  { %v632_v44 = vpack.c.bf16 %v630_v42, %v629_v41  ;;  %v633_v45 = vpack.c.bf16 %v631_v43, %v631_v43 }
 0x2e7   :  { %2053 = vmatprep.subr.bf16.mxu0 %v632_v44  ;;  %v639_v47 = vsel %vm86_vm1, %v633_v45, 0 }
 0x2e8   :  { %2054 = vmatpush3.bf16.msra.mxu0 %v632_v44 }
 0x2e9   :  { %2086 = vmatprep.subr.msk.bf16.mxu0 %vm86_vm1, %v633_v45 }
 0x2ec   :  { %2056 = vmatpush3.bf16.msra.mxu0 %v639_v47 }
 0x2ed   :  { %1971 = vmatprep.subr.bf16.mxu0 %v2161_v49 }
 0x2ef   :  { %2058 = vmatmul.mubr.msk.bf16.vlgmr.msra.gmra.mrb[12].mxu0 %vm79_vm0, %v2394_v14 }
 0x2f0   :  { %1972 = vmatpush3.bf16.msra.mxu0 %v2162_v50 }
 0x2f1   :  { %1973 = vmatprep.subr.bf16.mxu0 %v2163_v51 }
 0x2f4   :  { %1974 = vmatpush3.bf16.msra.mxu0 %v2164_v52 }
 0x2f5   :  { %1975 = vmatprep.subr.bf16.mxu0 %v2165_v53 }
 0x2f8   :  { %1976 = vmatpush3.bf16.msra.mxu0 %v2166_v54 }
 0x2f9   :  { %1977 = vmatprep.subr.bf16.mxu0 %v2167_v56  ;;  %v1810_v56 = vld [vmem:[%s2873_s6 + $0x1] ss:$0 sm:$0xff] }
 0x2fc   :  { %1978 = vmatpush3.bf16.msra.mxu0 %v2168_v57 }
 0x2fd   :  { %1979 = vmatprep.subr.bf16.mxu0 %v2169_v59 }
 0x300   :  { %1980 = vmatpush3.bf16.msra.mxu0 %v2170_v61 }
 0x301   :  { %1981 = vmatprep.subr.bf16.mxu0 %v2171_v62 }
 0x304   :  { %1982 = vmatpush3.bf16.msra.mxu0 %v2172_v20 }
 0x305   :  { %1983 = vmatprep.subr.bf16.mxu0 %v2173_v21  ;;  %v2177_v21 = vld [vmem:[%s2870_s3 + $0x100] ss:$8 sps:$4 sm:$0xff]  }
 0x308   :  { %1984 = vmatpush3.bf16.msra.mxu0 %v2174_v22 }
 0x309   :  { %1985 = vmatprep.subr.bf16.mxu0 %v2175_v23 }
 0x30c   :  { %1986 = vmatpush3.bf16.msra.mxu0 %v2176_v24  ;;  %v2182_v24 = vld [vmem:[%s2870_s3 + $0x114] ss:$8 sps:$4 sm:$0xff]  }
 0x391   :  { %v534_v0 = vpop.f32.mrb[8].mxu1 }
 0x392   :  { %v547_v1 = vmul.f32 %v1735_v63, %v534_v0  ;;  %v2051_v2 = vpop.f32.mrb[9].mxu1 }
 0x393   :  { %v537_v3 = vpop.f32.mrb[10].mxu1 }
 0x394   :  { %v2052_v4 = vpop.f32.mrb[11].mxu1  ;;  %v549_v5 = vsel %vm548_vm3, %v547_v1, 0.0 }
 0x395   :  { %550 = vadd.xlane.f32.xlu0 %v549_v5 }
 0x3c2   :  { %v2059_v6 = vpop.f32.mrb[12].mxu0 }
 0x3c3   :  { %v675_v8 = vpop.f32.mrb[13].mxu0  ;;  %v684_v18 = vadd.f32 %v2059_v6, %v1741_v17  ;;  %v2179_v17 = vld [vmem:[%s2870_s3 + $0x104] ss:$8 sps:$4 sm:$0xff]  }
 0x3c4   :  { %v2060_v11 = vpop.f32.mrb[14].mxu0  ;;  %v676_v13 = vadd.f32 %v1739_v9, %v675_v8 }
 0x3c5   :  { %v678_v12 = vpop.f32.mrb[15].mxu0  ;;  %v690_v19 = vpack.c.bf16 %v684_v18, %v684_v18 }
 0x3c6   :  { %v679_v15 = vadd.f32 %v1740_v10, %v678_v12 }
 0x3c8   :  { %v689_v16 = vpack.c.bf16 %v679_v15, %v676_v13 }
 0x3ca   :  { %834 = vmatmul.mubr.bf16.vlgmr.msra.gmra.mrb[12].mxu1 %v689_v16 }
 0x3cb   :  { %843 = vmatprep.mubr.bf16.mxu1 %v2276_v27 }
 0x3d2   :  { %844 = vmatmul.mubr.bf16.gmra.mrb[16].mxu1 %v690_v19 }
 0x3d3   :  { %2065 = vmatprep.mubr.msk.bf16.mxu1 %vm2278_vm2, %v2277_v25 }
 0x49d   :  { %v835_v30 = vpop.f32.mrb[12].mxu1 }
 0x49e   :  { %v836_v31 = vadd.f32 %v835_v30, %v714_v28  ;;  %v837_v32 = vpop.f32.mrb[13].mxu1 }
 0x49f   :  { %v838_v34 = vadd.f32 %v837_v32, %v718_v29  ;;  %v839_v36 = vpop.f32.mrb[14].mxu1  ;;  %v2185_v32 = vld [vmem:[%s2870_s3 + $0x124] ss:$8 sps:$4 sm:$0xff]  }
 0x4a0   :  { %v840_v37 = vadd.f32 %v839_v36, %v714_v28  ;;  %v841_v38 = vpop.f32.mrb[15].mxu1  ;;  %v852_v40 = vmax.f32 %v836_v31, 0.0 }
 0x4a1   :  { %v842_v39 = vadd.f32 %v841_v38, %v718_v29  ;;  %v853_v42 = vmax.f32 %v838_v34, 0.0 }
 0x4a2   :  { %v854_v41 = vmax.f32 %v840_v37, 0.0  ;;  %v2183_v37 = vld [vmem:[%s2870_s3 + $0x120] ss:$8 sps:$4 sm:$0xff]  }
 0x4a3   :  { %v855_v43 = vmax.f32 %v842_v39, 0.0 }
 0x4a4   :  { %v858_v44 = vpack.c.bf16 %v854_v41, %v852_v40  ;;  %v2188_v40 = vld [vmem:[%s2870_s3 + $0x134] ss:$8 sps:$4 sm:$0xff]  }
 0x4a5   :  { %v859_v45 = vpack.c.bf16 %v855_v43, %v853_v42  ;;  %v845_v47 = vpop.f32.mrb[16].mxu1  ;;  %v2186_v43 = vld [vmem:[%s2870_s3 + $0x130] ss:$8 sps:$4 sm:$0xff]  }
 0x4a6   :  { %v846_v33 = vadd.f32 %v845_v47, %v714_v28  ;;  %v847_v35 = vpop.f32.mrb[17].mxu1  ;;  %v2191_v47 = vld [vmem:[%s2870_s3 + $0x144] ss:$8 sps:$4 sm:$0xff]  }
 0x4a7   :  { %v848_v46 = vadd.f32 %v847_v35, %v718_v29  ;;  %v849_v48 = vpop.f32.mrb[18].mxu1  ;;  %1031 = vmatprep.mubr.bf16.mxu0 %v859_v45  ;;  %v2180_v29 = vld [vmem:[%s2870_s3 + $0x110] ss:$8 sps:$4 sm:$0xff]   ;;  %v2189_v35 = vld [vmem:[%s2870_s3 + $0x140] ss:$8 sps:$4 sm:$0xff]  }
 0x4a8   :  { %v850_v49 = vpop.f32.mrb[19].mxu1  ;;  %1032 = vmatmul.mubr.bf16.vlgmr.msra.gmra.mrb[16].mxu0 %v858_v44  ;;  %v856_v51 = vmax.f32 %v846_v33, 0.0  ;;  %v2194_v48 = vld [vmem:[%s2870_s3 + $0x154] ss:$8 sps:$4 sm:$0xff]  }
 0x4a9   :  { %v857_v50 = vmax.f32 %v848_v46, 0.0  ;;  %v2192_v49 = vld [vmem:[%s2870_s3 + $0x150] ss:$8 sps:$4 sm:$0xff]  }
 0x4aa   :  { %v860_v53 = vpack.c.bf16 %v856_v51, %v856_v51 }
 0x4ab   :  { %v861_v52 = vpack.c.bf16 %v857_v50, %v857_v50  ;;  %v1834_v50 = vld [vmem:[%s2874_s7 + $0x1] sm:$0x1] }
 0x4ad   :  { %1039 = vmatprep.mubr.bf16.mxu0 %v861_v52 }
 0x4b0   :  { %1040 = vmatmul.mubr.bf16.gmra.mrb[20].mxu0 %v860_v53  ;;  %v1835_v53 = vld [vmem:[%s2875_s8 + $0x1] sm:$0x1] }
 0x4b1   :  { %2073 = vmatprep.mubr.msk.bf16.mxu0 %vm79_vm0, %v2376_v7 }
 0x57b   :  { %v1987_v54 = vpop.f32.mrb[16].mxu0 }
 0x57c   :  { %v1988_v57 = vpop.f32.mrb[17].mxu0 }
 0x57d   :  { %v1989_v59 = vadd.f32 %v1988_v57, %v1987_v54  ;;  %v1990_v61 = vpop.f32.mrb[18].mxu0 }
 0x57e   :  { %v1991_v62 = vpop.f32.mrb[19].mxu0 }
 0x57f   :  { %v2671_v63 = vadd.f32 %v1989_v59, %v1810_v56  ;;  %v1992_v0 = vadd.f32 %v1991_v62, %v1990_v61 }
 0x581   :  { %v2673_v1 = vadd.f32 %v1992_v0, %v1810_v56  ;;  %v1137_v2 = vmul.f32 %v2671_v63, %v2671_v63 }
 0x583   :  { %v1128_v7 = vadd.f32 %v2673_v1, %v2671_v63  ;;  %v1138_v3 = vmul.f32 %v2673_v1, %v2673_v1  ;;  %v1993_v4 = vpop.f32.mrb[20].mxu0  ;;  %v1047_v5 = vpack.c.bf16 %v2673_v1, %v2671_v63 }
 0x584   :  { %v1994_v6 = vpop.f32.mrb[21].mxu0 }
 0x585   :  { %v1140_v8 = vadd.f32 %v1138_v3, %v1137_v2  ;;  %v1995_v9 = vadd.f32 %v1994_v6, %v1993_v4  ;;  %v1996_v10 = vpop.f32.mrb[22].mxu0  ;;  %2062 = vmatpush3.bf16.msra.mxu1 %v1047_v5 }
 0x586   :  { %v1997_v11 = vpop.f32.mrb[23].mxu0  ;;  %2063 = vmatprep.subr.bf16.mxu1 %v2277_v25 }
 0x587   :  { %v1042_v12 = vadd.f32 %v1995_v9, %v1810_v56  ;;  %v2200_v11 = vld [vmem:[%s2870_s3 + $0x174] ss:$8 sps:$4 sm:$0xff]  }
 0x589   :  { %v1129_v13 = vadd.f32 %v1128_v7, %v1042_v12  ;;  %v1139_v15 = vmul.f32 %v1042_v12, %v1042_v12  ;;  %v1048_v16 = vpack.c.bf16 %v1042_v12, %v1042_v12 }
 0x58b   :  { %v1130_v18 = vrot.slane %v1129_v13, 4  ;;  %v1141_v19 = vadd.f32 %v1140_v8, %v1139_v15  ;;  %v1050_v20 = vsel %vm86_vm1, %v1048_v16, 0  ;;  %v2203_v15 = vld [vmem:[%s2872_s5 + $0x148] sm:$0xff]  }
 0x58c   :  { %2064 = vmatpush3.bf16.msra.mxu1 %v1050_v20  ;;  %v2204_v16 = vld [vmem:[%s2872_s5 + $0x108] sm:$0xff]   ;;  %v2208_v20 = vld [vmem:[%s2872_s5 + $0x118] sm:$0xff]  }
 0x58d   :  { %v1131_v22 = vadd.f32 %v1130_v18, %v1129_v13  ;;  %v1142_v23 = vrot.slane %v1141_v19, 4  ;;  %1350 = vmatprep.subr.bf16.mxu1 %v2179_v17  ;;  %v2202_v13 = vld [vmem:[%s2872_s5 + $0x100] sm:$0xff]   ;;  %v2205_v17 = vld [vmem:[%s2872_s5 + $0x150] sm:$0xff]  }
 0x58e   :  { %v2206_v18 = vld [vmem:[%s2872_s5 + $0x110] sm:$0xff]  }
 0x58f   :  { %v1132_v26 = vrot.slane %v1131_v22, 2  ;;  %v1143_v28 = vadd.f32 %v1142_v23, %v1141_v19  ;;  %2066 = vmatmul.mubr.msk.bf16.vlgmr.msra.gmra.mrb[20].mxu1 %vm79_vm0, %v2532_v55  ;;  %v2207_v19 = vld [vmem:[%s2872_s5 + $0x158] sm:$0xff]   ;;  %v2211_v23 = vld [vmem:[%s2872_s5 + $0x168] sm:$0xff]  }
 0x590   :  { %1351 = vmatpush1.bf16.msra.mxu1 %v2177_v21  ;;  %1382 = vmatprep.mubr.bf16.mxu1 %v2276_v27  ;;  %v2209_v21 = vld [vmem:[%s2872_s5 + $0x160] sm:$0xff]  }
 0x591   :  { %v1133_v30 = vadd.f32 %v1132_v26, %v1131_v22  ;;  %v1144_v31 = vrot.slane %v1143_v28, 2  ;;  %1352 = vmatprep.subr.bf16.mxu1 %v2182_v24  ;;  %v2210_v22 = vld [vmem:[%s2872_s5 + $0x120] sm:$0xff]  }
 0x592   :  { %v1829_v24 = vld [vmem:[%s2877_s10 + $0x1] ss:$0 sm:$0xff] }
 0x593   :  { %v1134_v34 = vrot.slane %v1133_v30, 1  ;;  %v1145_v36 = vadd.f32 %v1144_v31, %v1143_v28 }
 0x594   :  { %1353 = vmatpush1.bf16.msra.mxu1 %v2180_v29 }
 0x595   :  { %v1135_v38 = vadd.f32 %v1134_v34, %v1133_v30  ;;  %v1146_v39 = vrot.slane %v1145_v36, 1  ;;  %1354 = vmatprep.subr.bf16.mxu1 %v2185_v32 }
 0x597   :  { %v1147_v41 = vadd.f32 %v1146_v39, %v1145_v36  ;;  %v1136_v42 = vmul.f32 0.041666668, %v1135_v38  ;;  %v1837_v38 = vld [vmem:[%s2869_s2 + $0x38] sm:$0xff] }
 0x598   :  { %1355 = vmatpush1.bf16.msra.mxu1 %v2183_v37  ;;  %v1836_v37 = vld [vmem:[%s2869_s2 + $0x30] sm:$0xff] }
 0x599   :  { %v1148_v44 = vmul.f32 0.041666668, %v1147_v41  ;;  %v1149_v45 = vmul.f32 %v1136_v42, %v1136_v42  ;;  %1356 = vmatprep.subr.bf16.mxu1 %v2188_v40 }
 0x59b   :  { %v1150_v33 = vsub.f32 %v1148_v44, %v1149_v45  ;;  %v1838_v44 = vld [vmem:[%s2869_s2 + $0x40] sm:$0xff] }
 0x59c   :  { %1357 = vmatpush1.bf16.msra.mxu1 %v2186_v43 }
 0x59d   :  { %v1153_v46 = vadd.f32 1e-05, %v1150_v33  ;;  %1358 = vmatprep.subr.bf16.mxu1 %v2191_v47  ;;  %v2212_v33 = vld [vmem:[%s2872_s5 + $0x128] sm:$0xff]  }
 0x59f   :  { %2219 = vrsqrt.f32 %v1153_v46  ;;  %v2214_v46 = vld [vmem:[%s2872_s5 + $0x130] sm:$0xff]  }
 0x5a0   :  { %1359 = vmatpush1.bf16.msra.mxu1 %v2189_v35  ;;  %v2213_v35 = vld [vmem:[%s2872_s5 + $0x170] sm:$0xff]  }
 0x5a1   :  { %1360 = vmatprep.subr.bf16.mxu1 %v2194_v48  ;;  %v2216_v48 = vld [vmem:[%s2872_s5 + $0x138] sm:$0xff]  }
 0x5a4   :  { %1361 = vmatpush1.bf16.msra.mxu1 %v2192_v49  ;;  %v2815_v49 = vpop.xlane.xlu0 %550 }
 0x5a9   :  { %v2220_v51 = vpop.eup %2219 }
 0x5aa   :  { %v1155_v52 = vmul.f32 %v2220_v51, %v1834_v50  ;;  %v1831_v50 = vld [vmem:[%s2878_s11 + $0x1] ss:$0 sm:$0xff] }
 0x5ac   :  { %v1158_v54 = vmul.f32 %v1155_v52, %v1136_v42  ;;  %v1164_v56 = vrot.slane %v1155_v52, %v2495_v58 }
 0x5ae   :  { %v1159_v57 = vsub.f32 %v1835_v53, %v1158_v54  ;;  %v1166_v59 = vmul.f32 %v1164_v56, %v2671_v63  ;;  %v1167_v61 = vmul.f32 %v1164_v56, %v2673_v1  ;;  %v1168_v62 = vmul.f32 %v1164_v56, %v1042_v12  ;;  %v2197_v63 = vld [vmem:[%s2870_s3 + $0x164] ss:$8 sps:$4 sm:$0xff]   ;;  %v2195_v1 = vld [vmem:[%s2870_s3 + $0x160] ss:$8 sps:$4 sm:$0xff]   ;;  %v2198_v12 = vld [vmem:[%s2870_s3 + $0x170] ss:$8 sps:$4 sm:$0xff]  }
 0x5af   :  { %1362 = vmatprep.subr.bf16.mxu1 %v2197_v63  ;;  %v1857_v53 = vld [vmem:[%s2871_s4 + $0x4] sm:$0x3] }
 0x5b0   :  { %v1173_v0 = vrot.slane %v1159_v57, %v2495_v58  ;;  %1363 = vmatpush1.bf16.msra.mxu1 %v2195_v1  ;;  %v1263_v54 = vrot.slane %v1857_v53, %v2495_v58  ;;  %v1267_v56 = vrot.slane %v1857_v53, %v2500_v60  ;;  %v1930_v53 = vld [vmem:[%s2879_s12 + $0x2] ss:$0 sm:$0xff] }
 0x5b1   :  { %1364 = vmatprep.subr.bf16.mxu1 %v2200_v11 }
 0x5b2   :  { %v1175_v2 = vadd.f32 %v1173_v0, %v1166_v59  ;;  %v1176_v7 = vadd.f32 %v1173_v0, %v1167_v61  ;;  %v1177_v3 = vadd.f32 %v1173_v0, %v1168_v62 }
 0x5b4   :  { %v1178_v4 = vmax.f32 %v1175_v2, 0.0  ;;  %v1179_v5 = vmax.f32 %v1176_v7, 0.0  ;;  %v1180_v6 = vmax.f32 %v1177_v3, 0.0  ;;  %1365 = vmatpush1.bf16.msra.mxu1 %v2198_v12 }
 0x5b5   :  { %2077 = vmatprep.subr.bf16.mxu1 %v2277_v25 }
 0x5b6   :  { %v1181_v8 = vpack.c.bf16 %v1179_v5, %v1178_v4  ;;  %v1182_v9 = vpack.c.bf16 %v1180_v6, %v1180_v6 }
 0x5b8   :  { %2069 = vmatprep.subr.bf16.mxu0 %v1181_v8  ;;  %v1188_v10 = vsel %vm86_vm1, %v1182_v9, 0 }
 0x5b9   :  { %2070 = vmatpush3.bf16.msra.mxu0 %v1181_v8 }
 0x5ba   :  { %2087 = vmatprep.subr.msk.bf16.mxu0 %vm86_vm1, %v1182_v9 }
 0x5bd   :  { %2072 = vmatpush3.bf16.msra.mxu0 %v1188_v10 }
 0x5c0   :  { %2074 = vmatmul.mubr.msk.bf16.vlgmr.msra.gmra.mrb[24].mxu0 %vm79_vm0, %v2394_v14  ;;  %v2201_v14 = vld [vmem:[%s2872_s5 + $0x140] sm:$0xff]  }
 0x5c1   :  { %2006 = vmatprep.subr.bf16.mxu0 %v2201_v14 }
 0x5c2   :  { %2007 = vmatpush3.bf16.msra.mxu0 %v2202_v13 }
 0x5c3   :  { %2008 = vmatprep.subr.bf16.mxu0 %v2203_v15 }
 0x5c6   :  { %2009 = vmatpush3.bf16.msra.mxu0 %v2204_v16 }
 0x5c7   :  { %2010 = vmatprep.subr.bf16.mxu0 %v2205_v17 }
 0x5ca   :  { %2011 = vmatpush3.bf16.msra.mxu0 %v2206_v18 }
 0x5cb   :  { %2012 = vmatprep.subr.bf16.mxu0 %v2207_v19 }
 0x5ce   :  { %2013 = vmatpush3.bf16.msra.mxu0 %v2208_v20 }
 0x5cf   :  { %2014 = vmatprep.subr.bf16.mxu0 %v2209_v21  ;;  %v1907_v21 = vld [vmem:[%s2873_s6 + $0x2] ss:$0 sm:$0xff] }
 0x5d2   :  { %2015 = vmatpush3.bf16.msra.mxu0 %v2210_v22 }
 0x5d3   :  { %2016 = vmatprep.subr.bf16.mxu0 %v2211_v23 }
 0x5d6   :  { %2017 = vmatpush3.bf16.msra.mxu0 %v2212_v33 }
 0x5d7   :  { %2018 = vmatprep.subr.bf16.mxu0 %v2213_v35 }
 0x5da   :  { %2019 = vmatpush3.bf16.msra.mxu0 %v2214_v46  ;;  %v1737_v46 = vld [vmem:[%s2879_s12] ss:$0 sm:$0xff] }
 0x662   :  { %v1086_v26 = vpop.f32.mrb[20].mxu1 }
 0x663   :  { %v1100_v28 = vmul.f32 %v1829_v24, %v1086_v26  ;;  %v2067_v29 = vpop.f32.mrb[21].mxu1 }
 0x664   :  { %v1089_v30 = vpop.f32.mrb[22].mxu1 }
 0x665   :  { %v2068_v31 = vpop.f32.mrb[23].mxu1  ;;  %v1101_v32 = vsel %vm548_vm3, %v1100_v28, 0.0 }
 0x666   :  { %1102 = vadd.xlane.f32.xlu0 %v1101_v32 }
 0x693   :  { %v2075_v34 = vpop.f32.mrb[24].mxu0 }
 0x694   :  { %v1224_v36 = vpop.f32.mrb[25].mxu0  ;;  %v1233_v45 = vadd.f32 %v2075_v34, %v1838_v44 }
 0x695   :  { %v2076_v39 = vpop.f32.mrb[26].mxu0  ;;  %v1225_v41 = vadd.f32 %v1836_v37, %v1224_v36 }
 0x696   :  { %v1227_v40 = vpop.f32.mrb[27].mxu0  ;;  %v1239_v47 = vpack.c.bf16 %v1233_v45, %v1233_v45  ;;  %v1926_v39 = vld [vmem:[%s2877_s10 + $0x2] ss:$0 sm:$0xff] }
 0x697   :  { %v1228_v42 = vadd.f32 %v1837_v38, %v1227_v40 }
 0x699   :  { %v1238_v43 = vpack.c.bf16 %v1228_v42, %v1225_v41 }
 0x69b   :  { %1383 = vmatmul.mubr.bf16.vlgmr.msra.gmra.mrb[24].mxu1 %v1238_v43 }
 0x69c   :  { %1392 = vmatprep.mubr.bf16.mxu1 %v2276_v27  ;;  %v2215_v27 = vld [vmem:[%s2872_s5 + $0x178] sm:$0xff]  }
 0x69d   :  { %2020 = vmatprep.subr.bf16.mxu0 %v2215_v27 }
 0x69e   :  { %2021 = vmatpush3.bf16.msra.mxu0 %v2216_v48 }
 0x6a3   :  { %1393 = vmatmul.mubr.bf16.gmra.mrb[28].mxu1 %v1239_v47 }
 0x6a4   :  { %2081 = vmatprep.mubr.msk.bf16.mxu1 %vm2278_vm2, %v2277_v25 }
 0x6f3   :  { %v1103_v51 = vpop.xlane.xlu0 %1102 }
 0x6f4   :  { %v1112_v52 = vadd.f32 %v1831_v50, %v1103_v51  ;;  %v1738_v50 = vld [vmem:[%s2880_s13] ss:$0 sm:$0xff]  ;;  %s2279_s13 = smov [#allocation5]  }
 0x6f5   :  { %s1690_s27 = sshll.u32 %s2279_s13, 4  ;;  %s1691_s27 = int_to_ptr.vmem [resolvable:$true] %s1690_s27 }
 0x6f6   :  { %1117 = vperm.xlu0 %2096, %v1112_v52   ;;  %s2247_s28 = scalar_lea.vmem %s1691_s27, 32  ;;  %p2252_p9 = scmp.lt.s32.totalorder %s1691_s27, %s1691_s27 }
 0x6f7   :  { %p2248_p8 = scmp.ne.s32.totalorder %s1691_s27, %s2247_s28  ;;  %p2253_p10 = scmp.lt.s32.totalorder %s2247_s28, %s2247_s28 }
 0x6f9   :  { %p2254_p11 = por %p2253_p10, %p2252_p9 }
 0x6fb   :  { %p2255_p12 = pnand %p2254_p11, %p2248_p8 }
 0x76e   :  { %v1384_v57 = vpop.f32.mrb[24].mxu1 }
 0x76f   :  { %v1385_v59 = vadd.f32 %v1384_v57, %v1263_v54  ;;  %v1386_v61 = vpop.f32.mrb[25].mxu1 }
 0x770   :  { %v1387_v62 = vadd.f32 %v1386_v61, %v1267_v56  ;;  %v1388_v0 = vpop.f32.mrb[26].mxu1 }
 0x771   :  { %v1389_v2 = vadd.f32 %v1388_v0, %v1263_v54  ;;  %v1390_v7 = vpop.f32.mrb[27].mxu1  ;;  %v1401_v4 = vmax.f32 %v1385_v59, 0.0 }
 0x772   :  { %v1391_v3 = vadd.f32 %v1390_v7, %v1267_v56  ;;  %v1402_v6 = vmax.f32 %v1387_v62, 0.0 }
 0x773   :  { %v1403_v5 = vmax.f32 %v1389_v2, 0.0 }
 0x774   :  { %v1404_v8 = vmax.f32 %v1391_v3, 0.0 }
 0x775   :  { %v1407_v9 = vpack.c.bf16 %v1403_v5, %v1401_v4  ;;  %v1118_v51 = vpop.permute.xlu0 %1117 }
 0x776   :  { %v1408_v10 = vpack.c.bf16 %v1404_v8, %v1402_v6  ;;  %v1394_v63 = vpop.f32.mrb[28].mxu1 }
 0x777   :  { %v1395_v1 = vadd.f32 %v1394_v63, %v1263_v54  ;;  %v1396_v11 = vpop.f32.mrb[29].mxu1 }
 0x778   :  { %v1397_v58 = vadd.f32 %v1396_v11, %v1267_v56  ;;  %v1398_v12 = vpop.f32.mrb[30].mxu1  ;;  %1580 = vmatprep.mubr.bf16.mxu0 %v1408_v10 }
 0x779   :  { %v1399_v60 = vpop.f32.mrb[31].mxu1  ;;  %1581 = vmatmul.mubr.bf16.vlgmr.msra.gmra.mrb[28].mxu0 %v1407_v9  ;;  %v1405_v13 = vmax.f32 %v1395_v1, 0.0 }
 0x77a   :  { %v1406_v14 = vmax.f32 %v1397_v58, 0.0 }
 0x77b   :  { %v1409_v16 = vpack.c.bf16 %v1405_v13, %v1405_v13 }
 0x77c   :  { %v1410_v15 = vpack.c.bf16 %v1406_v14, %v1406_v14 }
 0x77e   :  { %1588 = vmatprep.mubr.bf16.mxu0 %v1410_v15 }
 0x781   :  { %1589 = vmatmul.mubr.bf16.gmra.mrb[32].mxu0 %v1409_v16 }
 0x84c   :  { %v2022_v17 = vpop.f32.mrb[28].mxu0 }
 0x84d   :  { %v2023_v18 = vpop.f32.mrb[29].mxu0 }
 0x84e   :  { %v2024_v19 = vadd.f32 %v2023_v18, %v2022_v17  ;;  %v2025_v20 = vpop.f32.mrb[30].mxu0 }
 0x84f   :  { %v2026_v22 = vpop.f32.mrb[31].mxu0 }
 0x850   :  { %v2027_v23 = vadd.f32 %v2026_v22, %v2025_v20  ;;  %v1583_v24 = vadd.f32 %v2024_v19, %v1907_v21 }
 0x852   :  { %v1586_v26 = vadd.f32 %v2027_v23, %v1907_v21 }
 0x854   :  { %v1596_v28 = vpack.c.bf16 %v1586_v26, %v1583_v24  ;;  %v2028_v29 = vpop.f32.mrb[32].mxu0 }
 0x855   :  { %v2029_v30 = vpop.f32.mrb[33].mxu0 }
 0x856   :  { %v2030_v31 = vadd.f32 %v2029_v30, %v2028_v29  ;;  %v2031_v32 = vpop.f32.mrb[34].mxu0  ;;  %2078 = vmatpush3.bf16.msra.mxu1 %v1596_v28 }
 0x857   :  { %v2032_v34 = vpop.f32.mrb[35].mxu0  ;;  %2079 = vmatprep.subr.bf16.mxu1 %v2277_v25  ;;  %v1736_v25 = vld [vmem:[%s2878_s11] ss:$0 sm:$0xff] }
 0x858   :  { %v1591_v36 = vadd.f32 %v2030_v31, %v1907_v21  ;;  %v559_v47 = vadd.f32 %v1736_v25, %v2815_v49  ;;  %v1833_v49 = vld [vmem:[%s2879_s12 + $0x1] ss:$0 sm:$0xff] }
 0x859   :  { %v1126_v54 = vmul.f32 %v1833_v49, %v1118_v51 }
 0x85a   :  { %v1597_v37 = vpack.c.bf16 %v1591_v36, %v1591_v36 }
 0x85c   :  { %v1599_v38 = vsel %vm86_vm1, %v1597_v37, 0 }
 0x85d   :  { %2080 = vmatpush3.bf16.msra.mxu1 %v1599_v38 }
 0x860   :  { %2082 = vmatmul.mubr.msk.bf16.vlgmr.msra.gmra.mrb[32].mxu1 %vm79_vm0, %v2532_v55  ;;  %v1928_v55 = vld [vmem:[%s2878_s11 + $0x2] ss:$0 sm:$0xff] }
 0x933   :  { %v1635_v40 = vpop.f32.mrb[32].mxu1 }
 0x934   :  { %v1649_v41 = vmul.f32 %v1926_v39, %v1635_v40  ;;  %v2083_v42 = vpop.f32.mrb[33].mxu1 }
 0x935   :  { %v1638_v43 = vpop.f32.mrb[34].mxu1 }
 0x936   :  { %v1650_v44 = vsel %vm548_vm3, %v1649_v41, 0.0  ;;  %v2084_v45 = vpop.f32.mrb[35].mxu1 }
 0x937   :  { %1651 = vadd.xlane.f32.xlu1 %v1650_v44 }
 0x948   :  { %563 = vperm.xlu1 %2095, %v559_v47  }
 0x9c4   :  { %v1652_v33 = vpop.xlane.xlu1 %1651 }
 0x9c5   :  { %v1661_v35 = vadd.f32 %v1928_v55, %v1652_v33 }
 0x9c7   :  { %1666 = vperm.xlu1 %2095, %v1661_v35  }
 0x9c8   :  { %v564_v27 = vpop.permute.xlu1 %563 }
 0x9c9   :  { %v572_v48 = vmul.f32 %v1737_v46, %v564_v27 }
 0x9cb   :  { %v579_v52 = vadd.f32 %v1738_v50, %v572_v48 }
 0x9cd   :  { %v1127_v57 = vadd.f32 %v1126_v54, %v579_v52 }
 0xa46   :  { %v1667_v56 = vpop.permute.xlu1 %1666 }
 0xa47   :  { %v1675_v59 = vmul.f32 %v1930_v53, %v1667_v56 }
 0xa49   :  { %v1676_v61 = vadd.f32 %v1675_v59, %v1127_v57 }
 0xa4b   :  { %v1931_v62 = vmul.f32 -1.442695, %v1676_v61 }
 0xa4d   :  { %2221 = vpow2.f32 %v1931_v62 }
 0xa57   :  { %v2222_v0 = vpop.eup %2221 }
 0xa58   :  { %v1680_v2 = vadd.f32 1.0, %v2222_v0 }
 0xa5a   :  { %2223 = vrcp.f32 %v1680_v2 }
 0xa64   :  { %v2224_v7 = vpop.eup %2223 }
 0xa65   :  { %1683 = vst [vmem:[#allocation5] sm:$0x3] %v2224_v7 }
 0xa66   :  { %2258 = shalt.err (!%p2255_p12)
}
 0xa67   :  { %s2259_s2 = scalar_lea.hbm %s2881_s14, 32 }
 0xa68   :  { %p2260_p13 = scmp.ne.s32.totalorder %s2881_s14, %s2259_s2  ;;  %p2263_p0 = scmp.lt.u32.totalorder %s2259_s2, %s2881_s14 }
 0xa6a   :  { %p2265_p1 = pnand %p2263_p0, %p2260_p13 }
 0xa6c   :  { %2268 = shalt.err (!%p2265_p1)
}
 0xa6d   :  { %1693 = dma.vmem_to_hbm [thread:$0]  %s1691_s27, 32, %s2881_s14, [#allocation4]  }
 0xa6e   :  { %2271 = dma.done.wait [#allocation4], 32  }
 0xa6f   :  { %2272 = vsyncadd [#allocation4], 4294967264 }
 0xa70   :  { %1697 = vsyncpa [#allocation3], 1 }
 0xa71   :  { %1698 = vsyncpa [#allocation4], 1 }

</bundles_post_ra>
